<compile_context>
chip_gen: v5e
topology: v5e:2x2
jax: 0.10.0
libtpu: 0.0.40
codegen_flags: <defaults>
</compile_context>

<pallas_src>
import jax
import jax.numpy as jnp
from jax.experimental import pallas as pl
from jax.experimental.pallas import tpu as pltpu


def _make_lstm_kernel(batch, seq_len, hidden_dim, layer_dim):
    """Kernel over variadic refs:
       (x_tm, [w_ih_T, w_hh_T, b]*layer_dim, w_fc_T, b_fc, out, layer_buf)."""
    B, T, H = batch, seq_len, hidden_dim

    def kernel(*refs):
        n_in = 1 + 3 * layer_dim + 2
        x_ref = refs[0]                         # (T, B, D) bf16, time-major
        wrefs = refs[1:n_in]
        out_ref = refs[n_in]                    # (B, O) f32
        buf_ref = refs[n_in + 1]                # VMEM scratch (T, B, H) bf16

        layer_in_2d = x_ref[...].reshape(T * B, -1)        # (T*B, D_l) bf16
        h = jnp.zeros((B, H), jnp.float32)
        for l in range(layer_dim):
            w_ih_t = wrefs[3 * l][...]                     # (D_l, 4H) bf16
            w_hh_t = wrefs[3 * l + 1][...]                 # (H, 4H)  f32
            b = wrefs[3 * l + 2][...]                      # (1, 4H)  f32

            # Hoisted input projection + fused bias: one batched MXU op/layer.
            pre = jnp.dot(layer_in_2d, w_ih_t,
                          preferred_element_type=jnp.float32) + b  # (T*B, 4H)
            pre = pre.reshape(T, B, 4 * H)

            h = jnp.zeros((B, H), jnp.float32)
            c = jnp.zeros((B, H), jnp.float32)
            for t in range(T):                             # T is tiny: unroll
                # Only this matmul sits on the serial dependence chain.
                gates = pre[t] + jnp.dot(h, w_hh_t,
                                         preferred_element_type=jnp.float32)
                # Gate columns pre-permuted to [i, f, o, g]:
                sig = jax.nn.sigmoid(gates[:, :3 * H])     # one EUP op, (B,3H)
                i_g = sig[:, 0 * H:1 * H]
                f_g = sig[:, 1 * H:2 * H]
                o_g = sig[:, 2 * H:3 * H]
                g_g = jnp.tanh(gates[:, 3 * H:])           # one EUP op, (B,H)
                c = f_g * c + i_g * g_g                    # f32 cell state
                h = o_g * jnp.tanh(c)                      # f32 hidden state
                if l < layer_dim - 1:
                    buf_ref[t] = h.astype(jnp.bfloat16)    # per-step scratch
            if l < layer_dim - 1:
                layer_in_2d = buf_ref[...].reshape(T * B, H)  # next layer in

        w_fc_t = wrefs[-2][...]                            # (H, O) bf16
        b_fc = wrefs[-1][...]                              # (1, O) f32
        out_ref[...] = (jnp.dot(h.astype(jnp.bfloat16), w_fc_t,
                                preferred_element_type=jnp.float32) + b_fc)

    return kernel


def _reorder_gates(w, H):
    """torch gate order (i, f, g, o) -> (i, f, o, g) along the 4H leading axis."""
    return jnp.concatenate([w[:2 * H], w[3 * H:4 * H], w[2 * H:3 * H]], axis=0)


def lstm_model_forward(x, w_ih, w_hh, b_ih, b_hh, w_fc, b_fc):
    """x: (B, T, D) f32; w_ih[l]: (4H, D_l); w_hh[l]: (4H, H); b_*[l]: (4H,);
       w_fc: (O, H); b_fc: (O,). Returns (B, O) f32.
       Call under jax.jit so the reorders / transposes / casts fuse."""
    B, T, _ = x.shape
    L = len(w_ih)
    H = w_hh[0].shape[1]
    O = w_fc.shape[0]

    # Time-major input + bf16 input-projection operands + f32 recurrent weight
    # + pre-summed, gate-reordered biases (all fused under jit).
    args = [jnp.transpose(x, (1, 0, 2)).astype(jnp.bfloat16)]          # (T,B,D)
    for l in range(L):
        wi = _reorder_gates(jnp.asarray(w_ih[l], jnp.float32), H)
        wh = _reorder_gates(jnp.asarray(w_hh[l], jnp.float32), H)
        bb = _reorder_gates(jnp.asarray(b_ih[l], jnp.float32)
                            + jnp.asarray(b_hh[l], jnp.float32), H)
        args.append(wi.T.astype(jnp.bfloat16))                         # (D_l,4H)
        args.append(wh.T)                                              # (H,4H) f32
        args.append(bb[None, :])                                       # (1,4H) f32
    args.append(jnp.asarray(w_fc, jnp.float32).T.astype(jnp.bfloat16))  # (H,O)
    args.append(jnp.asarray(b_fc, jnp.float32)[None, :])                # (1,O)

    vmem = pl.BlockSpec(memory_space=pltpu.MemorySpace.VMEM)
    kernel = _make_lstm_kernel(B, T, H, L)
    # Footprint is a few hundred KB -> everything resident in VMEM; no grid /
    # tiling needed (a batch grid axis only pays off once B grows past toy size).
    return pl.pallas_call(
        kernel,
        out_shape=jax.ShapeDtypeStruct((B, O), jnp.float32),
        in_specs=[vmem] * len(args),
        out_specs=vmem,
        scratch_shapes=[pltpu.VMEM((T, B, H), jnp.bfloat16)],
    )(*args)


def _reference_forward(x, w_ih, w_hh, b_ih, b_hh, w_fc, b_fc):
    """Pure-JAX f32 reference matching torch.nn.LSTM + Linear semantics."""
    B, T, _ = x.shape
    L = len(w_ih)
    H = w_hh[0].shape[1]
    layer_in = x
    h = None
    for l in range(L):
        h = jnp.zeros((B, H), jnp.float32)
        c = jnp.zeros((B, H), jnp.float32)
        outs = []
        for t in range(T):
            g = layer_in[:, t, :] @ w_ih[l].T + h @ w_hh[l].T + b_ih[l] + b_hh[l]
            i = jax.nn.sigmoid(g[:, 0 * H:1 * H])
            f = jax.nn.sigmoid(g[:, 1 * H:2 * H])
            gg = jnp.tanh(g[:, 2 * H:3 * H])
            o = jax.nn.sigmoid(g[:, 3 * H:4 * H])
            c = f * c + i * gg
            h = o * jnp.tanh(c)
            outs.append(h)
        layer_in = jnp.stack(outs, axis=1)
    return h @ w_fc.T + b_fc


if __name__ == "__main__":
    # Model sizes
    input_dim, hidden_dim, layer_dim, output_dim = 16, 32, 2, 4
    B, T = 2, 8

    key = jax.random.PRNGKey(0)
    keys = iter(jax.random.split(key, 64))

    # Deterministic parameter init (PyTorch-style uniform ranges).
    k_lstm = 1.0 / jnp.sqrt(hidden_dim)
    w_ih, w_hh, b_ih, b_hh = [], [], [], []
    for l in range(layer_dim):
        d_in = input_dim if l == 0 else hidden_dim
        w_ih.append(jax.random.uniform(next(keys), (4 * hidden_dim, d_in),
                                       jnp.float32, -k_lstm, k_lstm))
        w_hh.append(jax.random.uniform(next(keys), (4 * hidden_dim, hidden_dim),
                                       jnp.float32, -k_lstm, k_lstm))
        b_ih.append(jax.random.uniform(next(keys), (4 * hidden_dim,),
                                       jnp.float32, -k_lstm, k_lstm))
        b_hh.append(jax.random.uniform(next(keys), (4 * hidden_dim,),
                                       jnp.float32, -k_lstm, k_lstm))
    k_fc = 1.0 / jnp.sqrt(hidden_dim)
    w_fc = jax.random.uniform(next(keys), (output_dim, hidden_dim),
                              jnp.float32, -k_fc, k_fc)
    b_fc = jax.random.uniform(next(keys), (output_dim,),
                              jnp.float32, -k_fc, k_fc)

    # Input
    x = jax.random.normal(next(keys), (B, T, input_dim), jnp.float32)

    forward = jax.jit(lstm_model_forward)
    out = forward(x, w_ih, w_hh, b_ih, b_hh, w_fc, b_fc)
    out = jax.block_until_ready(out)

    ref = _reference_forward(x, w_ih, w_hh, b_ih, b_hh, w_fc, b_fc)
    assert out.shape == (B, output_dim)
    # bf16 input-projection operands (f32 accumulation, f32 recurrence) vs the
    # f32 reference -> modest tolerance.
    assert jnp.allclose(out, ref, atol=5e-2, rtol=5e-2), "mismatch vs reference"

    print("KERNEL_OK")
</pallas_src>

<mosaic_0001>
module attributes {stable_mosaic.version = 11 : i64} {
  func.func @kernel(%arg0: memref<8x2x16xbf16, #tpu.memory_space<vmem>>, %arg1: memref<16x128xbf16, #tpu.memory_space<vmem>>, %arg2: memref<32x128xf32, #tpu.memory_space<vmem>>, %arg3: memref<1x128xf32, #tpu.memory_space<vmem>>, %arg4: memref<32x128xbf16, #tpu.memory_space<vmem>>, %arg5: memref<32x128xf32, #tpu.memory_space<vmem>>, %arg6: memref<1x128xf32, #tpu.memory_space<vmem>>, %arg7: memref<32x4xbf16, #tpu.memory_space<vmem>>, %arg8: memref<1x4xf32, #tpu.memory_space<vmem>>, %arg9: memref<2x4xf32, #tpu.memory_space<vmem>>, %arg10: memref<8x2x32xbf16, #tpu.memory_space<vmem>>) attributes {dimension_semantics = [], scalar_prefetch = 0 : i64, scratch_operands = 1 : i64, tpu.core_type = #tpu.core_type<tc>} {
    %c0 = arith.constant 0 : index
    %c0_0 = arith.constant 0 : index
    %c0_1 = arith.constant 0 : index
    %0 = vector.load %arg0[%c0, %c0_0, %c0_1] : memref<8x2x16xbf16, #tpu.memory_space<vmem>>, vector<8x2x16xbf16>
    %1 = vector.shape_cast %0 : vector<8x2x16xbf16> to vector<16x16xbf16>
    %c0_2 = arith.constant 0 : index
    %c0_3 = arith.constant 0 : index
    %2 = vector.load %arg1[%c0_2, %c0_3] : memref<16x128xbf16, #tpu.memory_space<vmem>>, vector<16x128xbf16>
    %c0_4 = arith.constant 0 : index
    %c0_5 = arith.constant 0 : index
    %3 = vector.load %arg2[%c0_4, %c0_5] : memref<32x128xf32, #tpu.memory_space<vmem>>, vector<32x128xf32>
    %c0_6 = arith.constant 0 : index
    %c0_7 = arith.constant 0 : index
    %4 = vector.load %arg3[%c0_6, %c0_7] : memref<1x128xf32, #tpu.memory_space<vmem>>, vector<1x128xf32>
    %cst = arith.constant dense<0.000000e+00> : vector<16x128xf32>
    %5 = tpu.matmul %1, %2, %cst {dimension_numbers = #tpu.dot_dimension_numbers<[1], [0], [0], [1], [0, 0, 1, 1], [], []>} : vector<16x16xbf16>, vector<16x128xbf16>, vector<16x128xf32> -> vector<16x128xf32>
    %6 = vector.broadcast %4 : vector<1x128xf32> to vector<16x128xf32>
    %7 = arith.addf %5, %6 : vector<16x128xf32>
    %8 = vector.shape_cast %7 : vector<16x128xf32> to vector<8x2x128xf32>
    %cst_8 = arith.constant 0.000000e+00 : f32
    %9 = vector.broadcast %cst_8 : f32 to vector<2x32xf32>
    %cst_9 = arith.constant 0.000000e+00 : f32
    %10 = vector.broadcast %cst_9 : f32 to vector<2x32xf32>
    %11 = vector.extract_strided_slice %8 {offsets = [0, 0, 0], sizes = [1, 2, 128], strides = [1, 1, 1]} : vector<8x2x128xf32> to vector<1x2x128xf32>
    %12 = vector.shape_cast %11 : vector<1x2x128xf32> to vector<2x128xf32>
    %cst_10 = arith.constant dense<0.000000e+00> : vector<2x128xf32>
    %13 = tpu.matmul %9, %3, %cst_10 {dimension_numbers = #tpu.dot_dimension_numbers<[1], [0], [0], [1], [0, 0, 1, 1], [], []>} : vector<2x32xf32>, vector<32x128xf32>, vector<2x128xf32> -> vector<2x128xf32>
    %14 = arith.addf %12, %13 : vector<2x128xf32>
    %15 = vector.extract_strided_slice %14 {offsets = [0, 0], sizes = [2, 96], strides = [1, 1]} : vector<2x128xf32> to vector<2x96xf32>
    %16 = arith.negf %15 : vector<2x96xf32>
    %17 = math.exp %16 : vector<2x96xf32>
    %cst_11 = arith.constant 1.000000e+00 : f32
    %18 = vector.broadcast %cst_11 : f32 to vector<2x96xf32>
    %19 = arith.addf %18, %17 : vector<2x96xf32>
    %20 = arith.divf %18, %19 : vector<2x96xf32>
    %21 = vector.extract_strided_slice %20 {offsets = [0, 0], sizes = [2, 32], strides = [1, 1]} : vector<2x96xf32> to vector<2x32xf32>
    %22 = vector.extract_strided_slice %20 {offsets = [0, 32], sizes = [2, 32], strides = [1, 1]} : vector<2x96xf32> to vector<2x32xf32>
    %23 = vector.extract_strided_slice %20 {offsets = [0, 64], sizes = [2, 32], strides = [1, 1]} : vector<2x96xf32> to vector<2x32xf32>
    %24 = vector.extract_strided_slice %14 {offsets = [0, 96], sizes = [2, 32], strides = [1, 1]} : vector<2x128xf32> to vector<2x32xf32>
    %25 = math.tanh %24 : vector<2x32xf32>
    %26 = arith.mulf %22, %10 : vector<2x32xf32>
    %27 = arith.mulf %21, %25 : vector<2x32xf32>
    %28 = arith.addf %26, %27 : vector<2x32xf32>
    %29 = math.tanh %28 : vector<2x32xf32>
    %30 = arith.mulf %23, %29 : vector<2x32xf32>
    %31 = arith.truncf %30 : vector<2x32xf32> to vector<2x32xbf16>
    %c0_12 = arith.constant 0 : index
    %c0_13 = arith.constant 0 : index
    %c0_14 = arith.constant 0 : index
    %32 = vector.load %arg10[%c0_12, %c0_13, %c0_14] : memref<8x2x32xbf16, #tpu.memory_space<vmem>>, vector<1x2x32xbf16>
    %33 = vector.shape_cast %32 : vector<1x2x32xbf16> to vector<2x32xbf16>
    %34 = vector.shape_cast %31 : vector<2x32xbf16> to vector<1x2x32xbf16>
    tpu.vector_store %arg10[%c0_12, %c0_13, %c0_14], %34 {strides = array<i32>} : memref<8x2x32xbf16, #tpu.memory_space<vmem>>, vector<1x2x32xbf16>,
    %35 = vector.extract_strided_slice %8 {offsets = [1, 0, 0], sizes = [1, 2, 128], strides = [1, 1, 1]} : vector<8x2x128xf32> to vector<1x2x128xf32>
    %36 = vector.shape_cast %35 : vector<1x2x128xf32> to vector<2x128xf32>
    %cst_15 = arith.constant dense<0.000000e+00> : vector<2x128xf32>
    %37 = tpu.matmul %30, %3, %cst_15 {dimension_numbers = #tpu.dot_dimension_numbers<[1], [0], [0], [1], [0, 0, 1, 1], [], []>} : vector<2x32xf32>, vector<32x128xf32>, vector<2x128xf32> -> vector<2x128xf32>
    %38 = arith.addf %36, %37 : vector<2x128xf32>
    %39 = vector.extract_strided_slice %38 {offsets = [0, 0], sizes = [2, 96], strides = [1, 1]} : vector<2x128xf32> to vector<2x96xf32>
    %40 = arith.negf %39 : vector<2x96xf32>
    %41 = math.exp %40 : vector<2x96xf32>
    %cst_16 = arith.constant 1.000000e+00 : f32
    %42 = vector.broadcast %cst_16 : f32 to vector<2x96xf32>
    %43 = arith.addf %42, %41 : vector<2x96xf32>
    %44 = arith.divf %42, %43 : vector<2x96xf32>
    %45 = vector.extract_strided_slice %44 {offsets = [0, 0], sizes = [2, 32], strides = [1, 1]} : vector<2x96xf32> to vector<2x32xf32>
    %46 = vector.extract_strided_slice %44 {offsets = [0, 32], sizes = [2, 32], strides = [1, 1]} : vector<2x96xf32> to vector<2x32xf32>
    %47 = vector.extract_strided_slice %44 {offsets = [0, 64], sizes = [2, 32], strides = [1, 1]} : vector<2x96xf32> to vector<2x32xf32>
    %48 = vector.extract_strided_slice %38 {offsets = [0, 96], sizes = [2, 32], strides = [1, 1]} : vector<2x128xf32> to vector<2x32xf32>
    %49 = math.tanh %48 : vector<2x32xf32>
    %50 = arith.mulf %46, %28 : vector<2x32xf32>
    %51 = arith.mulf %45, %49 : vector<2x32xf32>
    %52 = arith.addf %50, %51 : vector<2x32xf32>
    %53 = math.tanh %52 : vector<2x32xf32>
    %54 = arith.mulf %47, %53 : vector<2x32xf32>
    %55 = arith.truncf %54 : vector<2x32xf32> to vector<2x32xbf16>
    %c1 = arith.constant 1 : index
    %c0_17 = arith.constant 0 : index
    %c0_18 = arith.constant 0 : index
    %56 = vector.load %arg10[%c1, %c0_17, %c0_18] : memref<8x2x32xbf16, #tpu.memory_space<vmem>>, vector<1x2x32xbf16>
    %57 = vector.shape_cast %56 : vector<1x2x32xbf16> to vector<2x32xbf16>
    %58 = vector.shape_cast %55 : vector<2x32xbf16> to vector<1x2x32xbf16>
    tpu.vector_store %arg10[%c1, %c0_17, %c0_18], %58 {strides = array<i32>} : memref<8x2x32xbf16, #tpu.memory_space<vmem>>, vector<1x2x32xbf16>,
    %59 = vector.extract_strided_slice %8 {offsets = [2, 0, 0], sizes = [1, 2, 128], strides = [1, 1, 1]} : vector<8x2x128xf32> to vector<1x2x128xf32>
    %60 = vector.shape_cast %59 : vector<1x2x128xf32> to vector<2x128xf32>
    %cst_19 = arith.constant dense<0.000000e+00> : vector<2x128xf32>
    %61 = tpu.matmul %54, %3, %cst_19 {dimension_numbers = #tpu.dot_dimension_numbers<[1], [0], [0], [1], [0, 0, 1, 1], [], []>} : vector<2x32xf32>, vector<32x128xf32>, vector<2x128xf32> -> vector<2x128xf32>
    %62 = arith.addf %60, %61 : vector<2x128xf32>
    %63 = vector.extract_strided_slice %62 {offsets = [0, 0], sizes = [2, 96], strides = [1, 1]} : vector<2x128xf32> to vector<2x96xf32>
    %64 = arith.negf %63 : vector<2x96xf32>
    %65 = math.exp %64 : vector<2x96xf32>
    %cst_20 = arith.constant 1.000000e+00 : f32
    %66 = vector.broadcast %cst_20 : f32 to vector<2x96xf32>
    %67 = arith.addf %66, %65 : vector<2x96xf32>
    %68 = arith.divf %66, %67 : vector<2x96xf32>
    %69 = vector.extract_strided_slice %68 {offsets = [0, 0], sizes = [2, 32], strides = [1, 1]} : vector<2x96xf32> to vector<2x32xf32>
    %70 = vector.extract_strided_slice %68 {offsets = [0, 32], sizes = [2, 32], strides = [1, 1]} : vector<2x96xf32> to vector<2x32xf32>
    %71 = vector.extract_strided_slice %68 {offsets = [0, 64], sizes = [2, 32], strides = [1, 1]} : vector<2x96xf32> to vector<2x32xf32>
    %72 = vector.extract_strided_slice %62 {offsets = [0, 96], sizes = [2, 32], strides = [1, 1]} : vector<2x128xf32> to vector<2x32xf32>
    %73 = math.tanh %72 : vector<2x32xf32>
    %74 = arith.mulf %70, %52 : vector<2x32xf32>
    %75 = arith.mulf %69, %73 : vector<2x32xf32>
    %76 = arith.addf %74, %75 : vector<2x32xf32>
    %77 = math.tanh %76 : vector<2x32xf32>
    %78 = arith.mulf %71, %77 : vector<2x32xf32>
    %79 = arith.truncf %78 : vector<2x32xf32> to vector<2x32xbf16>
    %c2 = arith.constant 2 : index
    %c0_21 = arith.constant 0 : index
    %c0_22 = arith.constant 0 : index
    %80 = vector.load %arg10[%c2, %c0_21, %c0_22] : memref<8x2x32xbf16, #tpu.memory_space<vmem>>, vector<1x2x32xbf16>
    %81 = vector.shape_cast %80 : vector<1x2x32xbf16> to vector<2x32xbf16>
    %82 = vector.shape_cast %79 : vector<2x32xbf16> to vector<1x2x32xbf16>
    tpu.vector_store %arg10[%c2, %c0_21, %c0_22], %82 {strides = array<i32>} : memref<8x2x32xbf16, #tpu.memory_space<vmem>>, vector<1x2x32xbf16>,
    %83 = vector.extract_strided_slice %8 {offsets = [3, 0, 0], sizes = [1, 2, 128], strides = [1, 1, 1]} : vector<8x2x128xf32> to vector<1x2x128xf32>
    %84 = vector.shape_cast %83 : vector<1x2x128xf32> to vector<2x128xf32>
    %cst_23 = arith.constant dense<0.000000e+00> : vector<2x128xf32>
    %85 = tpu.matmul %78, %3, %cst_23 {dimension_numbers = #tpu.dot_dimension_numbers<[1], [0], [0], [1], [0, 0, 1, 1], [], []>} : vector<2x32xf32>, vector<32x128xf32>, vector<2x128xf32> -> vector<2x128xf32>
    %86 = arith.addf %84, %85 : vector<2x128xf32>
    %87 = vector.extract_strided_slice %86 {offsets = [0, 0], sizes = [2, 96], strides = [1, 1]} : vector<2x128xf32> to vector<2x96xf32>
    %88 = arith.negf %87 : vector<2x96xf32>
    %89 = math.exp %88 : vector<2x96xf32>
    %cst_24 = arith.constant 1.000000e+00 : f32
    %90 = vector.broadcast %cst_24 : f32 to vector<2x96xf32>
    %91 = arith.addf %90, %89 : vector<2x96xf32>
    %92 = arith.divf %90, %91 : vector<2x96xf32>
    %93 = vector.extract_strided_slice %92 {offsets = [0, 0], sizes = [2, 32], strides = [1, 1]} : vector<2x96xf32> to vector<2x32xf32>
    %94 = vector.extract_strided_slice %92 {offsets = [0, 32], sizes = [2, 32], strides = [1, 1]} : vector<2x96xf32> to vector<2x32xf32>
    %95 = vector.extract_strided_slice %92 {offsets = [0, 64], sizes = [2, 32], strides = [1, 1]} : vector<2x96xf32> to vector<2x32xf32>
    %96 = vector.extract_strided_slice %86 {offsets = [0, 96], sizes = [2, 32], strides = [1, 1]} : vector<2x128xf32> to vector<2x32xf32>
    %97 = math.tanh %96 : vector<2x32xf32>
    %98 = arith.mulf %94, %76 : vector<2x32xf32>
    %99 = arith.mulf %93, %97 : vector<2x32xf32>
    %100 = arith.addf %98, %99 : vector<2x32xf32>
    %101 = math.tanh %100 : vector<2x32xf32>
    %102 = arith.mulf %95, %101 : vector<2x32xf32>
    %103 = arith.truncf %102 : vector<2x32xf32> to vector<2x32xbf16>
    %c3 = arith.constant 3 : index
    %c0_25 = arith.constant 0 : index
    %c0_26 = arith.constant 0 : index
    %104 = vector.load %arg10[%c3, %c0_25, %c0_26] : memref<8x2x32xbf16, #tpu.memory_space<vmem>>, vector<1x2x32xbf16>
    %105 = vector.shape_cast %104 : vector<1x2x32xbf16> to vector<2x32xbf16>
    %106 = vector.shape_cast %103 : vector<2x32xbf16> to vector<1x2x32xbf16>
    tpu.vector_store %arg10[%c3, %c0_25, %c0_26], %106 {strides = array<i32>} : memref<8x2x32xbf16, #tpu.memory_space<vmem>>, vector<1x2x32xbf16>,
    %107 = vector.extract_strided_slice %8 {offsets = [4, 0, 0], sizes = [1, 2, 128], strides = [1, 1, 1]} : vector<8x2x128xf32> to vector<1x2x128xf32>
    %108 = vector.shape_cast %107 : vector<1x2x128xf32> to vector<2x128xf32>
    %cst_27 = arith.constant dense<0.000000e+00> : vector<2x128xf32>
    %109 = tpu.matmul %102, %3, %cst_27 {dimension_numbers = #tpu.dot_dimension_numbers<[1], [0], [0], [1], [0, 0, 1, 1], [], []>} : vector<2x32xf32>, vector<32x128xf32>, vector<2x128xf32> -> vector<2x128xf32>
    %110 = arith.addf %108, %109 : vector<2x128xf32>
    %111 = vector.extract_strided_slice %110 {offsets = [0, 0], sizes = [2, 96], strides = [1, 1]} : vector<2x128xf32> to vector<2x96xf32>
    %112 = arith.negf %111 : vector<2x96xf32>
    %113 = math.exp %112 : vector<2x96xf32>
    %cst_28 = arith.constant 1.000000e+00 : f32
    %114 = vector.broadcast %cst_28 : f32 to vector<2x96xf32>
    %115 = arith.addf %114, %113 : vector<2x96xf32>
    %116 = arith.divf %114, %115 : vector<2x96xf32>
    %117 = vector.extract_strided_slice %116 {offsets = [0, 0], sizes = [2, 32], strides = [1, 1]} : vector<2x96xf32> to vector<2x32xf32>
    %118 = vector.extract_strided_slice %116 {offsets = [0, 32], sizes = [2, 32], strides = [1, 1]} : vector<2x96xf32> to vector<2x32xf32>
    %119 = vector.extract_strided_slice %116 {offsets = [0, 64], sizes = [2, 32], strides = [1, 1]} : vector<2x96xf32> to vector<2x32xf32>
    %120 = vector.extract_strided_slice %110 {offsets = [0, 96], sizes = [2, 32], strides = [1, 1]} : vector<2x128xf32> to vector<2x32xf32>
    %121 = math.tanh %120 : vector<2x32xf32>
    %122 = arith.mulf %118, %100 : vector<2x32xf32>
    %123 = arith.mulf %117, %121 : vector<2x32xf32>
    %124 = arith.addf %122, %123 : vector<2x32xf32>
    %125 = math.tanh %124 : vector<2x32xf32>
    %126 = arith.mulf %119, %125 : vector<2x32xf32>
    %127 = arith.truncf %126 : vector<2x32xf32> to vector<2x32xbf16>
    %c4 = arith.constant 4 : index
    %c0_29 = arith.constant 0 : index
    %c0_30 = arith.constant 0 : index
    %128 = vector.load %arg10[%c4, %c0_29, %c0_30] : memref<8x2x32xbf16, #tpu.memory_space<vmem>>, vector<1x2x32xbf16>
    %129 = vector.shape_cast %128 : vector<1x2x32xbf16> to vector<2x32xbf16>
    %130 = vector.shape_cast %127 : vector<2x32xbf16> to vector<1x2x32xbf16>
    tpu.vector_store %arg10[%c4, %c0_29, %c0_30], %130 {strides = array<i32>} : memref<8x2x32xbf16, #tpu.memory_space<vmem>>, vector<1x2x32xbf16>,
    %131 = vector.extract_strided_slice %8 {offsets = [5, 0, 0], sizes = [1, 2, 128], strides = [1, 1, 1]} : vector<8x2x128xf32> to vector<1x2x128xf32>
    %132 = vector.shape_cast %131 : vector<1x2x128xf32> to vector<2x128xf32>
    %cst_31 = arith.constant dense<0.000000e+00> : vector<2x128xf32>
    %133 = tpu.matmul %126, %3, %cst_31 {dimension_numbers = #tpu.dot_dimension_numbers<[1], [0], [0], [1], [0, 0, 1, 1], [], []>} : vector<2x32xf32>, vector<32x128xf32>, vector<2x128xf32> -> vector<2x128xf32>
    %134 = arith.addf %132, %133 : vector<2x128xf32>
    %135 = vector.extract_strided_slice %134 {offsets = [0, 0], sizes = [2, 96], strides = [1, 1]} : vector<2x128xf32> to vector<2x96xf32>
    %136 = arith.negf %135 : vector<2x96xf32>
    %137 = math.exp %136 : vector<2x96xf32>
    %cst_32 = arith.constant 1.000000e+00 : f32
    %138 = vector.broadcast %cst_32 : f32 to vector<2x96xf32>
    %139 = arith.addf %138, %137 : vector<2x96xf32>
    %140 = arith.divf %138, %139 : vector<2x96xf32>
    %141 = vector.extract_strided_slice %140 {offsets = [0, 0], sizes = [2, 32], strides = [1, 1]} : vector<2x96xf32> to vector<2x32xf32>
    %142 = vector.extract_strided_slice %140 {offsets = [0, 32], sizes = [2, 32], strides = [1, 1]} : vector<2x96xf32> to vector<2x32xf32>
    %143 = vector.extract_strided_slice %140 {offsets = [0, 64], sizes = [2, 32], strides = [1, 1]} : vector<2x96xf32> to vector<2x32xf32>
    %144 = vector.extract_strided_slice %134 {offsets = [0, 96], sizes = [2, 32], strides = [1, 1]} : vector<2x128xf32> to vector<2x32xf32>
    %145 = math.tanh %144 : vector<2x32xf32>
    %146 = arith.mulf %142, %124 : vector<2x32xf32>
    %147 = arith.mulf %141, %145 : vector<2x32xf32>
    %148 = arith.addf %146, %147 : vector<2x32xf32>
    %149 = math.tanh %148 : vector<2x32xf32>
    %150 = arith.mulf %143, %149 : vector<2x32xf32>
    %151 = arith.truncf %150 : vector<2x32xf32> to vector<2x32xbf16>
    %c5 = arith.constant 5 : index
    %c0_33 = arith.constant 0 : index
    %c0_34 = arith.constant 0 : index
    %152 = vector.load %arg10[%c5, %c0_33, %c0_34] : memref<8x2x32xbf16, #tpu.memory_space<vmem>>, vector<1x2x32xbf16>
    %153 = vector.shape_cast %152 : vector<1x2x32xbf16> to vector<2x32xbf16>
    %154 = vector.shape_cast %151 : vector<2x32xbf16> to vector<1x2x32xbf16>
    tpu.vector_store %arg10[%c5, %c0_33, %c0_34], %154 {strides = array<i32>} : memref<8x2x32xbf16, #tpu.memory_space<vmem>>, vector<1x2x32xbf16>,
    %155 = vector.extract_strided_slice %8 {offsets = [6, 0, 0], sizes = [1, 2, 128], strides = [1, 1, 1]} : vector<8x2x128xf32> to vector<1x2x128xf32>
    %156 = vector.shape_cast %155 : vector<1x2x128xf32> to vector<2x128xf32>
    %cst_35 = arith.constant dense<0.000000e+00> : vector<2x128xf32>
    %157 = tpu.matmul %150, %3, %cst_35 {dimension_numbers = #tpu.dot_dimension_numbers<[1], [0], [0], [1], [0, 0, 1, 1], [], []>} : vector<2x32xf32>, vector<32x128xf32>, vector<2x128xf32> -> vector<2x128xf32>
    %158 = arith.addf %156, %157 : vector<2x128xf32>
    %159 = vector.extract_strided_slice %158 {offsets = [0, 0], sizes = [2, 96], strides = [1, 1]} : vector<2x128xf32> to vector<2x96xf32>
    %160 = arith.negf %159 : vector<2x96xf32>
    %161 = math.exp %160 : vector<2x96xf32>
    %cst_36 = arith.constant 1.000000e+00 : f32
    %162 = vector.broadcast %cst_36 : f32 to vector<2x96xf32>
    %163 = arith.addf %162, %161 : vector<2x96xf32>
    %164 = arith.divf %162, %163 : vector<2x96xf32>
    %165 = vector.extract_strided_slice %164 {offsets = [0, 0], sizes = [2, 32], strides = [1, 1]} : vector<2x96xf32> to vector<2x32xf32>
    %166 = vector.extract_strided_slice %164 {offsets = [0, 32], sizes = [2, 32], strides = [1, 1]} : vector<2x96xf32> to vector<2x32xf32>
    %167 = vector.extract_strided_slice %164 {offsets = [0, 64], sizes = [2, 32], strides = [1, 1]} : vector<2x96xf32> to vector<2x32xf32>
    %168 = vector.extract_strided_slice %158 {offsets = [0, 96], sizes = [2, 32], strides = [1, 1]} : vector<2x128xf32> to vector<2x32xf32>
    %169 = math.tanh %168 : vector<2x32xf32>
    %170 = arith.mulf %166, %148 : vector<2x32xf32>
    %171 = arith.mulf %165, %169 : vector<2x32xf32>
    %172 = arith.addf %170, %171 : vector<2x32xf32>
    %173 = math.tanh %172 : vector<2x32xf32>
    %174 = arith.mulf %167, %173 : vector<2x32xf32>
    %175 = arith.truncf %174 : vector<2x32xf32> to vector<2x32xbf16>
    %c6 = arith.constant 6 : index
    %c0_37 = arith.constant 0 : index
    %c0_38 = arith.constant 0 : index
    %176 = vector.load %arg10[%c6, %c0_37, %c0_38] : memref<8x2x32xbf16, #tpu.memory_space<vmem>>, vector<1x2x32xbf16>
    %177 = vector.shape_cast %176 : vector<1x2x32xbf16> to vector<2x32xbf16>
    %178 = vector.shape_cast %175 : vector<2x32xbf16> to vector<1x2x32xbf16>
    tpu.vector_store %arg10[%c6, %c0_37, %c0_38], %178 {strides = array<i32>} : memref<8x2x32xbf16, #tpu.memory_space<vmem>>, vector<1x2x32xbf16>,
    %179 = vector.extract_strided_slice %8 {offsets = [7, 0, 0], sizes = [1, 2, 128], strides = [1, 1, 1]} : vector<8x2x128xf32> to vector<1x2x128xf32>
    %180 = vector.shape_cast %179 : vector<1x2x128xf32> to vector<2x128xf32>
    %cst_39 = arith.constant dense<0.000000e+00> : vector<2x128xf32>
    %181 = tpu.matmul %174, %3, %cst_39 {dimension_numbers = #tpu.dot_dimension_numbers<[1], [0], [0], [1], [0, 0, 1, 1], [], []>} : vector<2x32xf32>, vector<32x128xf32>, vector<2x128xf32> -> vector<2x128xf32>
    %182 = arith.addf %180, %181 : vector<2x128xf32>
    %183 = vector.extract_strided_slice %182 {offsets = [0, 0], sizes = [2, 96], strides = [1, 1]} : vector<2x128xf32> to vector<2x96xf32>
    %184 = arith.negf %183 : vector<2x96xf32>
    %185 = math.exp %184 : vector<2x96xf32>
    %cst_40 = arith.constant 1.000000e+00 : f32
    %186 = vector.broadcast %cst_40 : f32 to vector<2x96xf32>
    %187 = arith.addf %186, %185 : vector<2x96xf32>
    %188 = arith.divf %186, %187 : vector<2x96xf32>
    %189 = vector.extract_strided_slice %188 {offsets = [0, 0], sizes = [2, 32], strides = [1, 1]} : vector<2x96xf32> to vector<2x32xf32>
    %190 = vector.extract_strided_slice %188 {offsets = [0, 32], sizes = [2, 32], strides = [1, 1]} : vector<2x96xf32> to vector<2x32xf32>
    %191 = vector.extract_strided_slice %188 {offsets = [0, 64], sizes = [2, 32], strides = [1, 1]} : vector<2x96xf32> to vector<2x32xf32>
    %192 = vector.extract_strided_slice %182 {offsets = [0, 96], sizes = [2, 32], strides = [1, 1]} : vector<2x128xf32> to vector<2x32xf32>
    %193 = math.tanh %192 : vector<2x32xf32>
    %194 = arith.mulf %190, %172 : vector<2x32xf32>
    %195 = arith.mulf %189, %193 : vector<2x32xf32>
    %196 = arith.addf %194, %195 : vector<2x32xf32>
    %197 = math.tanh %196 : vector<2x32xf32>
    %198 = arith.mulf %191, %197 : vector<2x32xf32>
    %199 = arith.truncf %198 : vector<2x32xf32> to vector<2x32xbf16>
    %c7 = arith.constant 7 : index
    %c0_41 = arith.constant 0 : index
    %c0_42 = arith.constant 0 : index
    %200 = vector.load %arg10[%c7, %c0_41, %c0_42] : memref<8x2x32xbf16, #tpu.memory_space<vmem>>, vector<1x2x32xbf16>
    %201 = vector.shape_cast %200 : vector<1x2x32xbf16> to vector<2x32xbf16>
    %202 = vector.shape_cast %199 : vector<2x32xbf16> to vector<1x2x32xbf16>
    tpu.vector_store %arg10[%c7, %c0_41, %c0_42], %202 {strides = array<i32>} : memref<8x2x32xbf16, #tpu.memory_space<vmem>>, vector<1x2x32xbf16>,
    %c0_43 = arith.constant 0 : index
    %c0_44 = arith.constant 0 : index
    %c0_45 = arith.constant 0 : index
    %203 = vector.load %arg10[%c0_43, %c0_44, %c0_45] : memref<8x2x32xbf16, #tpu.memory_space<vmem>>, vector<8x2x32xbf16>
    %204 = vector.shape_cast %203 : vector<8x2x32xbf16> to vector<16x32xbf16>
    %c0_46 = arith.constant 0 : index
    %c0_47 = arith.constant 0 : index
    %205 = vector.load %arg4[%c0_46, %c0_47] : memref<32x128xbf16, #tpu.memory_space<vmem>>, vector<32x128xbf16>
    %c0_48 = arith.constant 0 : index
    %c0_49 = arith.constant 0 : index
    %206 = vector.load %arg5[%c0_48, %c0_49] : memref<32x128xf32, #tpu.memory_space<vmem>>, vector<32x128xf32>
    %c0_50 = arith.constant 0 : index
    %c0_51 = arith.constant 0 : index
    %207 = vector.load %arg6[%c0_50, %c0_51] : memref<1x128xf32, #tpu.memory_space<vmem>>, vector<1x128xf32>
    %cst_52 = arith.constant dense<0.000000e+00> : vector<16x128xf32>
    %208 = tpu.matmul %204, %205, %cst_52 {dimension_numbers = #tpu.dot_dimension_numbers<[1], [0], [0], [1], [0, 0, 1, 1], [], []>} : vector<16x32xbf16>, vector<32x128xbf16>, vector<16x128xf32> -> vector<16x128xf32>
    %209 = vector.broadcast %207 : vector<1x128xf32> to vector<16x128xf32>
    %210 = arith.addf %208, %209 : vector<16x128xf32>
    %211 = vector.shape_cast %210 : vector<16x128xf32> to vector<8x2x128xf32>
    %cst_53 = arith.constant 0.000000e+00 : f32
    %212 = vector.broadcast %cst_53 : f32 to vector<2x32xf32>
    %cst_54 = arith.constant 0.000000e+00 : f32
    %213 = vector.broadcast %cst_54 : f32 to vector<2x32xf32>
    %214 = vector.extract_strided_slice %211 {offsets = [0, 0, 0], sizes = [1, 2, 128], strides = [1, 1, 1]} : vector<8x2x128xf32> to vector<1x2x128xf32>
    %215 = vector.shape_cast %214 : vector<1x2x128xf32> to vector<2x128xf32>
    %cst_55 = arith.constant dense<0.000000e+00> : vector<2x128xf32>
    %216 = tpu.matmul %212, %206, %cst_55 {dimension_numbers = #tpu.dot_dimension_numbers<[1], [0], [0], [1], [0, 0, 1, 1], [], []>} : vector<2x32xf32>, vector<32x128xf32>, vector<2x128xf32> -> vector<2x128xf32>
    %217 = arith.addf %215, %216 : vector<2x128xf32>
    %218 = vector.extract_strided_slice %217 {offsets = [0, 0], sizes = [2, 96], strides = [1, 1]} : vector<2x128xf32> to vector<2x96xf32>
    %219 = arith.negf %218 : vector<2x96xf32>
    %220 = math.exp %219 : vector<2x96xf32>
    %cst_56 = arith.constant 1.000000e+00 : f32
    %221 = vector.broadcast %cst_56 : f32 to vector<2x96xf32>
    %222 = arith.addf %221, %220 : vector<2x96xf32>
    %223 = arith.divf %221, %222 : vector<2x96xf32>
    %224 = vector.extract_strided_slice %223 {offsets = [0, 0], sizes = [2, 32], strides = [1, 1]} : vector<2x96xf32> to vector<2x32xf32>
    %225 = vector.extract_strided_slice %223 {offsets = [0, 32], sizes = [2, 32], strides = [1, 1]} : vector<2x96xf32> to vector<2x32xf32>
    %226 = vector.extract_strided_slice %223 {offsets = [0, 64], sizes = [2, 32], strides = [1, 1]} : vector<2x96xf32> to vector<2x32xf32>
    %227 = vector.extract_strided_slice %217 {offsets = [0, 96], sizes = [2, 32], strides = [1, 1]} : vector<2x128xf32> to vector<2x32xf32>
    %228 = math.tanh %227 : vector<2x32xf32>
    %229 = arith.mulf %225, %213 : vector<2x32xf32>
    %230 = arith.mulf %224, %228 : vector<2x32xf32>
    %231 = arith.addf %229, %230 : vector<2x32xf32>
    %232 = math.tanh %231 : vector<2x32xf32>
    %233 = arith.mulf %226, %232 : vector<2x32xf32>
    %234 = vector.extract_strided_slice %211 {offsets = [1, 0, 0], sizes = [1, 2, 128], strides = [1, 1, 1]} : vector<8x2x128xf32> to vector<1x2x128xf32>
    %235 = vector.shape_cast %234 : vector<1x2x128xf32> to vector<2x128xf32>
    %cst_57 = arith.constant dense<0.000000e+00> : vector<2x128xf32>
    %236 = tpu.matmul %233, %206, %cst_57 {dimension_numbers = #tpu.dot_dimension_numbers<[1], [0], [0], [1], [0, 0, 1, 1], [], []>} : vector<2x32xf32>, vector<32x128xf32>, vector<2x128xf32> -> vector<2x128xf32>
    %237 = arith.addf %235, %236 : vector<2x128xf32>
    %238 = vector.extract_strided_slice %237 {offsets = [0, 0], sizes = [2, 96], strides = [1, 1]} : vector<2x128xf32> to vector<2x96xf32>
    %239 = arith.negf %238 : vector<2x96xf32>
    %240 = math.exp %239 : vector<2x96xf32>
    %cst_58 = arith.constant 1.000000e+00 : f32
    %241 = vector.broadcast %cst_58 : f32 to vector<2x96xf32>
    %242 = arith.addf %241, %240 : vector<2x96xf32>
    %243 = arith.divf %241, %242 : vector<2x96xf32>
    %244 = vector.extract_strided_slice %243 {offsets = [0, 0], sizes = [2, 32], strides = [1, 1]} : vector<2x96xf32> to vector<2x32xf32>
    %245 = vector.extract_strided_slice %243 {offsets = [0, 32], sizes = [2, 32], strides = [1, 1]} : vector<2x96xf32> to vector<2x32xf32>
    %246 = vector.extract_strided_slice %243 {offsets = [0, 64], sizes = [2, 32], strides = [1, 1]} : vector<2x96xf32> to vector<2x32xf32>
    %247 = vector.extract_strided_slice %237 {offsets = [0, 96], sizes = [2, 32], strides = [1, 1]} : vector<2x128xf32> to vector<2x32xf32>
    %248 = math.tanh %247 : vector<2x32xf32>
    %249 = arith.mulf %245, %231 : vector<2x32xf32>
    %250 = arith.mulf %244, %248 : vector<2x32xf32>
    %251 = arith.addf %249, %250 : vector<2x32xf32>
    %252 = math.tanh %251 : vector<2x32xf32>
    %253 = arith.mulf %246, %252 : vector<2x32xf32>
    %254 = vector.extract_strided_slice %211 {offsets = [2, 0, 0], sizes = [1, 2, 128], strides = [1, 1, 1]} : vector<8x2x128xf32> to vector<1x2x128xf32>
    %255 = vector.shape_cast %254 : vector<1x2x128xf32> to vector<2x128xf32>
    %cst_59 = arith.constant dense<0.000000e+00> : vector<2x128xf32>
    %256 = tpu.matmul %253, %206, %cst_59 {dimension_numbers = #tpu.dot_dimension_numbers<[1], [0], [0], [1], [0, 0, 1, 1], [], []>} : vector<2x32xf32>, vector<32x128xf32>, vector<2x128xf32> -> vector<2x128xf32>
    %257 = arith.addf %255, %256 : vector<2x128xf32>
    %258 = vector.extract_strided_slice %257 {offsets = [0, 0], sizes = [2, 96], strides = [1, 1]} : vector<2x128xf32> to vector<2x96xf32>
    %259 = arith.negf %258 : vector<2x96xf32>
    %260 = math.exp %259 : vector<2x96xf32>
    %cst_60 = arith.constant 1.000000e+00 : f32
    %261 = vector.broadcast %cst_60 : f32 to vector<2x96xf32>
    %262 = arith.addf %261, %260 : vector<2x96xf32>
    %263 = arith.divf %261, %262 : vector<2x96xf32>
    %264 = vector.extract_strided_slice %263 {offsets = [0, 0], sizes = [2, 32], strides = [1, 1]} : vector<2x96xf32> to vector<2x32xf32>
    %265 = vector.extract_strided_slice %263 {offsets = [0, 32], sizes = [2, 32], strides = [1, 1]} : vector<2x96xf32> to vector<2x32xf32>
    %266 = vector.extract_strided_slice %263 {offsets = [0, 64], sizes = [2, 32], strides = [1, 1]} : vector<2x96xf32> to vector<2x32xf32>
    %267 = vector.extract_strided_slice %257 {offsets = [0, 96], sizes = [2, 32], strides = [1, 1]} : vector<2x128xf32> to vector<2x32xf32>
    %268 = math.tanh %267 : vector<2x32xf32>
    %269 = arith.mulf %265, %251 : vector<2x32xf32>
    %270 = arith.mulf %264, %268 : vector<2x32xf32>
    %271 = arith.addf %269, %270 : vector<2x32xf32>
    %272 = math.tanh %271 : vector<2x32xf32>
    %273 = arith.mulf %266, %272 : vector<2x32xf32>
    %274 = vector.extract_strided_slice %211 {offsets = [3, 0, 0], sizes = [1, 2, 128], strides = [1, 1, 1]} : vector<8x2x128xf32> to vector<1x2x128xf32>
    %275 = vector.shape_cast %274 : vector<1x2x128xf32> to vector<2x128xf32>
    %cst_61 = arith.constant dense<0.000000e+00> : vector<2x128xf32>
    %276 = tpu.matmul %273, %206, %cst_61 {dimension_numbers = #tpu.dot_dimension_numbers<[1], [0], [0], [1], [0, 0, 1, 1], [], []>} : vector<2x32xf32>, vector<32x128xf32>, vector<2x128xf32> -> vector<2x128xf32>
    %277 = arith.addf %275, %276 : vector<2x128xf32>
    %278 = vector.extract_strided_slice %277 {offsets = [0, 0], sizes = [2, 96], strides = [1, 1]} : vector<2x128xf32> to vector<2x96xf32>
    %279 = arith.negf %278 : vector<2x96xf32>
    %280 = math.exp %279 : vector<2x96xf32>
    %cst_62 = arith.constant 1.000000e+00 : f32
    %281 = vector.broadcast %cst_62 : f32 to vector<2x96xf32>
    %282 = arith.addf %281, %280 : vector<2x96xf32>
    %283 = arith.divf %281, %282 : vector<2x96xf32>
    %284 = vector.extract_strided_slice %283 {offsets = [0, 0], sizes = [2, 32], strides = [1, 1]} : vector<2x96xf32> to vector<2x32xf32>
    %285 = vector.extract_strided_slice %283 {offsets = [0, 32], sizes = [2, 32], strides = [1, 1]} : vector<2x96xf32> to vector<2x32xf32>
    %286 = vector.extract_strided_slice %283 {offsets = [0, 64], sizes = [2, 32], strides = [1, 1]} : vector<2x96xf32> to vector<2x32xf32>
    %287 = vector.extract_strided_slice %277 {offsets = [0, 96], sizes = [2, 32], strides = [1, 1]} : vector<2x128xf32> to vector<2x32xf32>
    %288 = math.tanh %287 : vector<2x32xf32>
    %289 = arith.mulf %285, %271 : vector<2x32xf32>
    %290 = arith.mulf %284, %288 : vector<2x32xf32>
    %291 = arith.addf %289, %290 : vector<2x32xf32>
    %292 = math.tanh %291 : vector<2x32xf32>
    %293 = arith.mulf %286, %292 : vector<2x32xf32>
    %294 = vector.extract_strided_slice %211 {offsets = [4, 0, 0], sizes = [1, 2, 128], strides = [1, 1, 1]} : vector<8x2x128xf32> to vector<1x2x128xf32>
    %295 = vector.shape_cast %294 : vector<1x2x128xf32> to vector<2x128xf32>
    %cst_63 = arith.constant dense<0.000000e+00> : vector<2x128xf32>
    %296 = tpu.matmul %293, %206, %cst_63 {dimension_numbers = #tpu.dot_dimension_numbers<[1], [0], [0], [1], [0, 0, 1, 1], [], []>} : vector<2x32xf32>, vector<32x128xf32>, vector<2x128xf32> -> vector<2x128xf32>
    %297 = arith.addf %295, %296 : vector<2x128xf32>
    %298 = vector.extract_strided_slice %297 {offsets = [0, 0], sizes = [2, 96], strides = [1, 1]} : vector<2x128xf32> to vector<2x96xf32>
    %299 = arith.negf %298 : vector<2x96xf32>
    %300 = math.exp %299 : vector<2x96xf32>
    %cst_64 = arith.constant 1.000000e+00 : f32
    %301 = vector.broadcast %cst_64 : f32 to vector<2x96xf32>
    %302 = arith.addf %301, %300 : vector<2x96xf32>
    %303 = arith.divf %301, %302 : vector<2x96xf32>
    %304 = vector.extract_strided_slice %303 {offsets = [0, 0], sizes = [2, 32], strides = [1, 1]} : vector<2x96xf32> to vector<2x32xf32>
    %305 = vector.extract_strided_slice %303 {offsets = [0, 32], sizes = [2, 32], strides = [1, 1]} : vector<2x96xf32> to vector<2x32xf32>
    %306 = vector.extract_strided_slice %303 {offsets = [0, 64], sizes = [2, 32], strides = [1, 1]} : vector<2x96xf32> to vector<2x32xf32>
    %307 = vector.extract_strided_slice %297 {offsets = [0, 96], sizes = [2, 32], strides = [1, 1]} : vector<2x128xf32> to vector<2x32xf32>
    %308 = math.tanh %307 : vector<2x32xf32>
    %309 = arith.mulf %305, %291 : vector<2x32xf32>
    %310 = arith.mulf %304, %308 : vector<2x32xf32>
    %311 = arith.addf %309, %310 : vector<2x32xf32>
    %312 = math.tanh %311 : vector<2x32xf32>
    %313 = arith.mulf %306, %312 : vector<2x32xf32>
    %314 = vector.extract_strided_slice %211 {offsets = [5, 0, 0], sizes = [1, 2, 128], strides = [1, 1, 1]} : vector<8x2x128xf32> to vector<1x2x128xf32>
    %315 = vector.shape_cast %314 : vector<1x2x128xf32> to vector<2x128xf32>
    %cst_65 = arith.constant dense<0.000000e+00> : vector<2x128xf32>
    %316 = tpu.matmul %313, %206, %cst_65 {dimension_numbers = #tpu.dot_dimension_numbers<[1], [0], [0], [1], [0, 0, 1, 1], [], []>} : vector<2x32xf32>, vector<32x128xf32>, vector<2x128xf32> -> vector<2x128xf32>
    %317 = arith.addf %315, %316 : vector<2x128xf32>
    %318 = vector.extract_strided_slice %317 {offsets = [0, 0], sizes = [2, 96], strides = [1, 1]} : vector<2x128xf32> to vector<2x96xf32>
    %319 = arith.negf %318 : vector<2x96xf32>
    %320 = math.exp %319 : vector<2x96xf32>
    %cst_66 = arith.constant 1.000000e+00 : f32
    %321 = vector.broadcast %cst_66 : f32 to vector<2x96xf32>
    %322 = arith.addf %321, %320 : vector<2x96xf32>
    %323 = arith.divf %321, %322 : vector<2x96xf32>
    %324 = vector.extract_strided_slice %323 {offsets = [0, 0], sizes = [2, 32], strides = [1, 1]} : vector<2x96xf32> to vector<2x32xf32>
    %325 = vector.extract_strided_slice %323 {offsets = [0, 32], sizes = [2, 32], strides = [1, 1]} : vector<2x96xf32> to vector<2x32xf32>
    %326 = vector.extract_strided_slice %323 {offsets = [0, 64], sizes = [2, 32], strides = [1, 1]} : vector<2x96xf32> to vector<2x32xf32>
    %327 = vector.extract_strided_slice %317 {offsets = [0, 96], sizes = [2, 32], strides = [1, 1]} : vector<2x128xf32> to vector<2x32xf32>
    %328 = math.tanh %327 : vector<2x32xf32>
    %329 = arith.mulf %325, %311 : vector<2x32xf32>
    %330 = arith.mulf %324, %328 : vector<2x32xf32>
    %331 = arith.addf %329, %330 : vector<2x32xf32>
    %332 = math.tanh %331 : vector<2x32xf32>
    %333 = arith.mulf %326, %332 : vector<2x32xf32>
    %334 = vector.extract_strided_slice %211 {offsets = [6, 0, 0], sizes = [1, 2, 128], strides = [1, 1, 1]} : vector<8x2x128xf32> to vector<1x2x128xf32>
    %335 = vector.shape_cast %334 : vector<1x2x128xf32> to vector<2x128xf32>
    %cst_67 = arith.constant dense<0.000000e+00> : vector<2x128xf32>
    %336 = tpu.matmul %333, %206, %cst_67 {dimension_numbers = #tpu.dot_dimension_numbers<[1], [0], [0], [1], [0, 0, 1, 1], [], []>} : vector<2x32xf32>, vector<32x128xf32>, vector<2x128xf32> -> vector<2x128xf32>
    %337 = arith.addf %335, %336 : vector<2x128xf32>
    %338 = vector.extract_strided_slice %337 {offsets = [0, 0], sizes = [2, 96], strides = [1, 1]} : vector<2x128xf32> to vector<2x96xf32>
    %339 = arith.negf %338 : vector<2x96xf32>
    %340 = math.exp %339 : vector<2x96xf32>
    %cst_68 = arith.constant 1.000000e+00 : f32
    %341 = vector.broadcast %cst_68 : f32 to vector<2x96xf32>
    %342 = arith.addf %341, %340 : vector<2x96xf32>
    %343 = arith.divf %341, %342 : vector<2x96xf32>
    %344 = vector.extract_strided_slice %343 {offsets = [0, 0], sizes = [2, 32], strides = [1, 1]} : vector<2x96xf32> to vector<2x32xf32>
    %345 = vector.extract_strided_slice %343 {offsets = [0, 32], sizes = [2, 32], strides = [1, 1]} : vector<2x96xf32> to vector<2x32xf32>
    %346 = vector.extract_strided_slice %343 {offsets = [0, 64], sizes = [2, 32], strides = [1, 1]} : vector<2x96xf32> to vector<2x32xf32>
    %347 = vector.extract_strided_slice %337 {offsets = [0, 96], sizes = [2, 32], strides = [1, 1]} : vector<2x128xf32> to vector<2x32xf32>
    %348 = math.tanh %347 : vector<2x32xf32>
    %349 = arith.mulf %345, %331 : vector<2x32xf32>
    %350 = arith.mulf %344, %348 : vector<2x32xf32>
    %351 = arith.addf %349, %350 : vector<2x32xf32>
    %352 = math.tanh %351 : vector<2x32xf32>
    %353 = arith.mulf %346, %352 : vector<2x32xf32>
    %354 = vector.extract_strided_slice %211 {offsets = [7, 0, 0], sizes = [1, 2, 128], strides = [1, 1, 1]} : vector<8x2x128xf32> to vector<1x2x128xf32>
    %355 = vector.shape_cast %354 : vector<1x2x128xf32> to vector<2x128xf32>
    %cst_69 = arith.constant dense<0.000000e+00> : vector<2x128xf32>
    %356 = tpu.matmul %353, %206, %cst_69 {dimension_numbers = #tpu.dot_dimension_numbers<[1], [0], [0], [1], [0, 0, 1, 1], [], []>} : vector<2x32xf32>, vector<32x128xf32>, vector<2x128xf32> -> vector<2x128xf32>
    %357 = arith.addf %355, %356 : vector<2x128xf32>
    %358 = vector.extract_strided_slice %357 {offsets = [0, 0], sizes = [2, 96], strides = [1, 1]} : vector<2x128xf32> to vector<2x96xf32>
    %359 = arith.negf %358 : vector<2x96xf32>
    %360 = math.exp %359 : vector<2x96xf32>
    %cst_70 = arith.constant 1.000000e+00 : f32
    %361 = vector.broadcast %cst_70 : f32 to vector<2x96xf32>
    %362 = arith.addf %361, %360 : vector<2x96xf32>
    %363 = arith.divf %361, %362 : vector<2x96xf32>
    %364 = vector.extract_strided_slice %363 {offsets = [0, 0], sizes = [2, 32], strides = [1, 1]} : vector<2x96xf32> to vector<2x32xf32>
    %365 = vector.extract_strided_slice %363 {offsets = [0, 32], sizes = [2, 32], strides = [1, 1]} : vector<2x96xf32> to vector<2x32xf32>
    %366 = vector.extract_strided_slice %363 {offsets = [0, 64], sizes = [2, 32], strides = [1, 1]} : vector<2x96xf32> to vector<2x32xf32>
    %367 = vector.extract_strided_slice %357 {offsets = [0, 96], sizes = [2, 32], strides = [1, 1]} : vector<2x128xf32> to vector<2x32xf32>
    %368 = math.tanh %367 : vector<2x32xf32>
    %369 = arith.mulf %365, %351 : vector<2x32xf32>
    %370 = arith.mulf %364, %368 : vector<2x32xf32>
    %371 = arith.addf %369, %370 : vector<2x32xf32>
    %372 = math.tanh %371 : vector<2x32xf32>
    %373 = arith.mulf %366, %372 : vector<2x32xf32>
    %c0_71 = arith.constant 0 : index
    %c0_72 = arith.constant 0 : index
    %374 = vector.load %arg7[%c0_71, %c0_72] : memref<32x4xbf16, #tpu.memory_space<vmem>>, vector<32x4xbf16>
    %c0_73 = arith.constant 0 : index
    %c0_74 = arith.constant 0 : index
    %375 = vector.load %arg8[%c0_73, %c0_74] : memref<1x4xf32, #tpu.memory_space<vmem>>, vector<1x4xf32>
    %376 = arith.truncf %373 : vector<2x32xf32> to vector<2x32xbf16>
    %cst_75 = arith.constant dense<0.000000e+00> : vector<2x4xf32>
    %377 = tpu.matmul %376, %374, %cst_75 {dimension_numbers = #tpu.dot_dimension_numbers<[1], [0], [0], [1], [0, 0, 1, 1], [], []>} : vector<2x32xbf16>, vector<32x4xbf16>, vector<2x4xf32> -> vector<2x4xf32>
    %378 = vector.broadcast %375 : vector<1x4xf32> to vector<2x4xf32>
    %379 = arith.addf %377, %378 : vector<2x4xf32>
    %c0_76 = arith.constant 0 : index
    %c0_77 = arith.constant 0 : index
    %380 = vector.load %arg9[%c0_76, %c0_77] : memref<2x4xf32, #tpu.memory_space<vmem>>, vector<2x4xf32>
    tpu.vector_store %arg9[%c0_76, %c0_77], %379 {strides = array<i32>} : memref<2x4xf32, #tpu.memory_space<vmem>>, vector<2x4xf32>,
    return
  }
}

</mosaic_0001>

<bundles_post_ra>
// kernel: lstm_model_forward.1
= control target key start
LH: loop header
LB: loop body
LE: loop exit
PB: predicated region body
PF: predicated region fallthrough
CT: control target
= control target key end

     0   :  { %s1943_s0 = inlined_call_operand.vmem [shape: bf16[8,2,16], index: 0, kind: input, shape index: {}]   ;;  %s1944_s1 = inlined_call_operand.vmem [shape: bf16[16,128], index: 1, kind: input, shape index: {}]   ;;  %s1945_s2 = inlined_call_operand.vmem [shape: f32[32,128], index: 2, kind: input, shape index: {}]   ;;  %s1946_s3 = inlined_call_operand.vmem [shape: f32[1,128], index: 3, kind: input, shape index: {}]   ;;  %s1947_s4 = inlined_call_operand.vmem [shape: bf16[32,128], index: 4, kind: input, shape index: {}]   ;;  %s1948_s5 = inlined_call_operand.vmem [shape: f32[32,128], index: 5, kind: input, shape index: {}]   ;;  %s1949_s6 = inlined_call_operand.vmem [shape: f32[1,128], index: 6, kind: input, shape index: {}]   ;;  %s1950_s7 = inlined_call_operand.vmem [shape: bf16[32,4], index: 7, kind: input, shape index: {}]   ;;  %s1951_s8 = inlined_call_operand.vmem [shape: f32[1,4], index: 8, kind: input, shape index: {}]   ;;  %s1952_s9 = inlined_call_operand.hbm [shape: f32[2,4], index: 9, kind: output, shape index: {}]  }
   0x1   :  { %v1660_v0 = vld [vmem:[%s1945_s2 + $0x18] sm:$0xff]  ;;  %v1437_v1 = vld [vmem:[%s1944_s1] sm:$0xff]  ;;  %v1668_v2 = vld [vmem:[%s1945_s2 + $0x10] sm:$0xff] }
   0x2   :  { %129 = vmatpush.msra.mxu1 %v1660_v0  ;;  %v34_v3 = vld [vmem:[%s1943_s0] sm:$0x1]  ;;  %207 = vmatpush.msra.mxu2 %v1660_v0  ;;  %v1678_v4 = vld [vmem:[%s1945_s2 + $0x8] sm:$0xff]  ;;  %v35_v5 = vld [vmem:[%s1943_s0 + $0x1] sm:$0x1] }
   0x3   :  { %92 = vmatpush.bf16.msra.mxu0 %v1437_v1  ;;  %284 = vmatpush.msra.mxu3 %v1660_v0  ;;  %v36_v6 = vld [vmem:[%s1943_s0 + $0x2] sm:$0x1]  ;;  %v37_v7 = vld [vmem:[%s1943_s0 + $0x3] sm:$0x1]  ;;  %v38_v8 = vld [vmem:[%s1943_s0 + $0x4] sm:$0x1] }
   0x4   :  { %130 = vmatpush.msra.mxu1 %v1668_v2  ;;  %208 = vmatpush.msra.mxu2 %v1668_v2  ;;  %53 = vst [vmem:[#allocation1] ss:$9 sm:$0xff] %v34_v3  ;;  %v1698_v9 = vld [vmem:[%s1945_s2] sm:$0xff] }
   0x5   :  { %285 = vmatpush.msra.mxu3 %v1668_v2  ;;  %v39_v10 = vld [vmem:[%s1943_s0 + $0x5] sm:$0x1]  ;;  %56 = vst [vmem:[#allocation1 + $0x1] ss:$9 sm:$0xff] %v35_v5 }
   0x6   :  { %131 = vmatpush.msra.mxu1 %v1678_v4  ;;  %209 = vmatpush.msra.mxu2 %v1678_v4  ;;  %59 = vst [vmem:[#allocation1 + $0x2] ss:$9 sm:$0xff] %v36_v6 }
   0x7   :  { %286 = vmatpush.msra.mxu3 %v1678_v4 }
   0x8   :  { %14 = vsyncpa [#allocation4], 0  ;;  %v40_v11 = vld [vmem:[%s1943_s0 + $0x6] sm:$0x1]  ;;  %62 = vst [vmem:[#allocation1 + $0x3] ss:$9 sm:$0xff] %v37_v7  ;;  %132 = vmatpush.msra.mxu1 %v1698_v9  ;;  %210 = vmatpush.msra.mxu2 %v1698_v9 }
   0x9   :  { %v41_v12 = vld [vmem:[%s1943_s0 + $0x7] sm:$0x1]  ;;  %65 = vst [vmem:[#allocation1 + $0x4] ss:$9 sm:$0xff] %v38_v8  ;;  %v1603_v13 = vmov 0.0   ;;  %287 = vmatpush.msra.mxu3 %v1698_v9  ;;  %vm82_vm0 = vcmask 130048  }
   0xa   :  { %133 = vmatmul.f32.vlgmr.msra.gmra.mxu1 %v1603_v13  ;;  %68 = vst [vmem:[#allocation1 + $0x5] ss:$9 sm:$0xff] %v39_v10  ;;  %438 = vmatpush.msrb.mxu2 %v1660_v0  ;;  %v1736_v15 = vld [vmem:[%s1946_s3] ss:$0 sm:$0xff]  ;;  %s1604_s13 = smov 32   ;;  %s1605_s3 = smov 64  }
   0xb   :  { %361 = vmatpush.msrb.mxu1 %v1660_v0  ;;  %71 = vst [vmem:[#allocation1 + $0x6] ss:$9 sm:$0xff] %v40_v11  ;;  %515 = vmatpush.msrb.mxu3 %v1660_v0  ;;  %vm113_vm5 = vcmask 261120   ;;  %s1606_s30 = smov [#allocation3]   ;;  %s1375_s0 = sshll.u32 %s1952_s9, 4  ;;  %s1376_s0 = int_to_ptr.hbm [resolvable:$true] %s1375_s0 }
   0xc   :  { %74 = vst [vmem:[#allocation1 + $0x7] ss:$9 sm:$0xff] %v41_v12  ;;  %439 = vmatpush.msrb.mxu2 %v1668_v2  ;;  %s1373_s10 = sshll.u32 %s1606_s30, 4  ;;  %s1374_s10 = int_to_ptr.vmem [resolvable:$true] %s1373_s10 }
   0xd   :  { %362 = vmatpush.msrb.mxu1 %v1668_v2  ;;  %516 = vmatpush.msrb.mxu3 %v1668_v2 }
   0xe   :  { %440 = vmatpush.msrb.mxu2 %v1678_v4 }
   0xf   :  { %363 = vmatpush.msrb.mxu1 %v1678_v4  ;;  %517 = vmatpush.msrb.mxu3 %v1678_v4 }
  0x10   :  { %441 = vmatpush.msrb.mxu2 %v1698_v9 }
  0x11   :  { %364 = vmatpush.msrb.mxu1 %v1698_v9  ;;  %518 = vmatpush.msrb.mxu3 %v1698_v9 }
  0x13   :  { %592 = vmatpush.msra.mxu1 %v1660_v0  ;;  %v75_v14 = vld [vmem:[#allocation1] sm:$0xff] }
  0x14   :  { %1388 = vmatmul.msk.bf16.vlgmr.msra.gmra.mxu0 %vm82_vm0, %v75_v14 }
  0x15   :  { %593 = vmatpush.msra.mxu1 %v1668_v2 }
  0x17   :  { %594 = vmatpush.msra.mxu1 %v1678_v4 }
  0x19   :  { %595 = vmatpush.msra.mxu1 %v1698_v9 }
  0x87   :  { %v134_v17 = vpop.f32.mrf.mxu1 }
  0x91   :  { %v94_v16 = vpop.f32.mrf.mxu0 }
  0x92   :  { %v1739_v18 = vadd.f32 %v1736_v15, %v94_v16 }
  0x94   :  { %v137_v19 = vadd.f32 %v134_v17, %v1739_v18  ;;  %v101_v44 = vrot.slane %v1739_v18, 2  ;;  %v102_v11 = vrot.slane %v1739_v18, 4 }
  0x96   :  { %1449 = vtanh.f32 %v137_v19  ;;  %v1389_v21 = vmul.f32 -1.442695, %v137_v19 }
  0x98   :  { %1451 = vpow2.f32 %v1389_v21 }
  0x9c   :  { %v1450_v20 = vpop.eup %1449 }
  0x9d   :  { %160 = vrot.lane.b32.xlu0 %v1450_v20, %s1604_s13 }
  0x9e   :  { %v1452_v22 = vpop.eup %1451 }
  0x9f   :  { %v141_v23 = vadd.f32 1.0, %v1452_v22 }
  0xa1   :  { %1453 = vrcp.f32 %v141_v23  ;;  %v153_v29 = vand.u32 2147483648, %v141_v23  ;;  %vm147_vm2 = vweird.f32 %v141_v23  ;;  %v151_v30 = vand.u32 2147483647, %v141_v23 }
  0xa3   :  { %v154_v32 = vor.u32 1.1754944e-38, %v153_v29  ;;  %vm152_vm4 = vcmp.eq.f32.partialorder %v151_v30, 8.507059e+37 }
  0xa7   :  { %v1454_v24 = vpop.eup %1453 }
  0xa8   :  { %v143_v25 = vmul.f32 %v1454_v24, %v141_v23  ;;  %vm148_vm1 = vweird.f32 %v1454_v24 }
  0xa9   :  { %vm149_vm3 = vmor %vm147_vm2, %vm148_vm1 }
  0xaa   :  { %v144_v26 = vsub.f32 1.0, %v143_v25 }
  0xac   :  { %v145_v27 = vmul.f32 %v1454_v24, %v144_v26 }
  0xae   :  { %v146_v28 = vadd.f32 %v1454_v24, %v145_v27 }
  0xb0   :  { %v150_v31 = vsel %vm149_vm3, %v1454_v24, %v146_v28 }
  0xb1   :  { %v155_v34 = vsel %vm152_vm4, %v154_v32, %v150_v31 }
  0xb2   :  { %v158_v36 = vmul.f32 0.0, %v155_v34 }
 0x10f   :  { %v161_v33 = vpop.permute.xlu0 %160 }
 0x110   :  { %v163_v35 = vmul.f32 %v161_v33, %v155_v34 }
 0x112   :  { %165 = vrot.lane.b32.xlu0 %v163_v35, %s1604_s13 }
 0x184   :  { %v166_v37 = vpop.permute.xlu0 %165 }
 0x185   :  { %v168_v38 = vadd.f32 %v166_v37, %v158_v36 }
 0x187   :  { %1455 = vtanh.f32 %v168_v38 }
 0x18d   :  { %v1456_v39 = vpop.eup %1455 }
 0x18e   :  { %171 = vrot.lane.b32.xlu1 %v1456_v39, %s1604_s13 }
 0x200   :  { %v172_v40 = vpop.permute.xlu1 %171 }
 0x201   :  { %v1745_v41 = vmul.f32 %v172_v40, %v155_v34 }
 0x203   :  { %189 = vst [vmem:[#allocation1] ss:$4 sm:$0xff] %v1745_v41 }
 0x20a   :  { %v190_v42 = vld.sshfl [vmem:[#allocation1] sm:$0xff pattern:$0x73625140] }
 0x20b   :  { %191 = vrot.lane.b32.xlu1 %v190_v42, %s1605_s3  ;;  %v103_v42 = vrot.slane %v1739_v18, 6 }
 0x27d   :  { %v192_v43 = vpop.permute.xlu1 %191 }
 0x27e   :  { %1390 = vmatmul.msk.f32.vlgmr.msra.gmra.mxu2 %vm113_vm5, %v192_v43 }
 0x301   :  { %v212_v45 = vpop.f32.mrf.mxu2 }
 0x302   :  { %v215_v46 = vadd.f32 %v212_v45, %v101_v44 }
 0x304   :  { %1457 = vtanh.f32 %v215_v46  ;;  %v1391_v48 = vmul.f32 -1.442695, %v215_v46 }
 0x306   :  { %1459 = vpow2.f32 %v1391_v48 }
 0x30a   :  { %v1458_v47 = vpop.eup %1457 }
 0x30b   :  { %238 = vrot.lane.b32.xlu2 %v1458_v47, %s1604_s13 }
 0x30c   :  { %v1460_v49 = vpop.eup %1459 }
 0x30d   :  { %v219_v50 = vadd.f32 1.0, %v1460_v49 }
 0x30f   :  { %1461 = vrcp.f32 %v219_v50  ;;  %v231_v56 = vand.u32 2147483648, %v219_v50  ;;  %vm225_vm7 = vweird.f32 %v219_v50  ;;  %v229_v57 = vand.u32 2147483647, %v219_v50 }
 0x311   :  { %v232_v59 = vor.u32 1.1754944e-38, %v231_v56  ;;  %vm230_vm9 = vcmp.eq.f32.partialorder %v229_v57, 8.507059e+37 }
 0x315   :  { %v1462_v51 = vpop.eup %1461 }
 0x316   :  { %v221_v52 = vmul.f32 %v1462_v51, %v219_v50  ;;  %vm226_vm6 = vweird.f32 %v1462_v51 }
 0x317   :  { %vm227_vm8 = vmor %vm225_vm7, %vm226_vm6 }
 0x318   :  { %v222_v53 = vsub.f32 1.0, %v221_v52 }
 0x31a   :  { %v223_v54 = vmul.f32 %v1462_v51, %v222_v53 }
 0x31c   :  { %v224_v55 = vadd.f32 %v1462_v51, %v223_v54 }
 0x31e   :  { %v228_v58 = vsel %vm227_vm8, %v1462_v51, %v224_v55 }
 0x31f   :  { %v233_v61 = vsel %vm230_vm9, %v232_v59, %v228_v58 }
 0x320   :  { %v236_v63 = vmul.f32 %v233_v61, %v168_v38 }
 0x365   :  { %v239_v60 = vpop.permute.xlu2 %238 }
 0x366   :  { %v241_v62 = vmul.f32 %v239_v60, %v233_v61 }
 0x368   :  { %243 = vrot.lane.b32.xlu2 %v241_v62, %s1604_s13 }
 0x3c2   :  { %v244_v1 = vpop.permute.xlu2 %243 }
 0x3c3   :  { %v246_v3 = vadd.f32 %v244_v1, %v236_v63  ;;  %v96_v1 = vpop.f32.mrf.mxu0 }
 0x3c5   :  { %1463 = vtanh.f32 %v246_v3 }
 0x3cb   :  { %v1464_v5 = vpop.eup %1463 }
 0x3cc   :  { %249 = vrot.lane.b32.xlu0 %v1464_v5, %s1604_s13 }
 0x43e   :  { %v250_v6 = vpop.permute.xlu0 %249 }
 0x43f   :  { %v1754_v7 = vmul.f32 %v250_v6, %v233_v61 }
 0x441   :  { %266 = vst [vmem:[#allocation1] ss:$4 sm:$0xff] %v1754_v7 }
 0x448   :  { %v267_v8 = vld.sshfl [vmem:[#allocation1] sm:$0xff pattern:$0x73625140] }
 0x449   :  { %268 = vrot.lane.b32.xlu1 %v267_v8, %s1605_s3 }
 0x4bb   :  { %v269_v10 = vpop.permute.xlu1 %268 }
 0x4bc   :  { %1392 = vmatmul.msk.f32.vlgmr.msra.gmra.mxu3 %vm113_vm5, %v269_v10 }
 0x53f   :  { %v289_v12 = vpop.f32.mrf.mxu3 }
 0x540   :  { %v292_v14 = vadd.f32 %v289_v12, %v102_v11 }
 0x542   :  { %1465 = vtanh.f32 %v292_v14  ;;  %v1393_v17 = vmul.f32 -1.442695, %v292_v14 }
 0x544   :  { %1467 = vpow2.f32 %v1393_v17 }
 0x548   :  { %v1466_v16 = vpop.eup %1465 }
 0x549   :  { %315 = vrot.lane.b32.xlu2 %v1466_v16, %s1604_s13 }
 0x54a   :  { %v1468_v19 = vpop.eup %1467 }
 0x54b   :  { %v296_v20 = vadd.f32 1.0, %v1468_v19 }
 0x54d   :  { %1469 = vrcp.f32 %v296_v20  ;;  %v308_v26 = vand.u32 2147483648, %v296_v20  ;;  %vm302_vm11 = vweird.f32 %v296_v20  ;;  %v306_v27 = vand.u32 2147483647, %v296_v20 }
 0x54f   :  { %v309_v29 = vor.u32 1.1754944e-38, %v308_v26  ;;  %vm307_vm13 = vcmp.eq.f32.partialorder %v306_v27, 8.507059e+37 }
 0x553   :  { %v1470_v21 = vpop.eup %1469 }
 0x554   :  { %v298_v22 = vmul.f32 %v1470_v21, %v296_v20  ;;  %vm303_vm10 = vweird.f32 %v1470_v21 }
 0x555   :  { %vm304_vm12 = vmor %vm302_vm11, %vm303_vm10 }
 0x556   :  { %v299_v23 = vsub.f32 1.0, %v298_v22 }
 0x558   :  { %v300_v24 = vmul.f32 %v1470_v21, %v299_v23 }
 0x55a   :  { %v301_v25 = vadd.f32 %v1470_v21, %v300_v24 }
 0x55c   :  { %v305_v28 = vsel %vm304_vm12, %v1470_v21, %v301_v25 }
 0x55d   :  { %v310_v31 = vsel %vm307_vm13, %v309_v29, %v305_v28 }
 0x55e   :  { %v313_v33 = vmul.f32 %v310_v31, %v246_v3  ;;  %v1782_v3 = vadd.f32 %v1736_v15, %v96_v1 }
 0x5a3   :  { %v316_v30 = vpop.permute.xlu2 %315 }
 0x5a4   :  { %v318_v32 = vmul.f32 %v316_v30, %v310_v31 }
 0x5a6   :  { %320 = vrot.lane.b32.xlu0 %v318_v32, %s1604_s13 }
 0x618   :  { %v321_v34 = vpop.permute.xlu0 %320 }
 0x619   :  { %v323_v35 = vadd.f32 %v321_v34, %v313_v33 }
 0x61b   :  { %1471 = vtanh.f32 %v323_v35 }
 0x621   :  { %v1472_v36 = vpop.eup %1471 }
 0x622   :  { %326 = vrot.lane.b32.xlu1 %v1472_v36, %s1604_s13 }
 0x694   :  { %v327_v37 = vpop.permute.xlu1 %326 }
 0x695   :  { %v1763_v38 = vmul.f32 %v327_v37, %v310_v31 }
 0x697   :  { %343 = vst [vmem:[#allocation1] ss:$4 sm:$0xff] %v1763_v38 }
 0x69e   :  { %v344_v39 = vld.sshfl [vmem:[#allocation1] sm:$0xff pattern:$0x73625140] }
 0x69f   :  { %345 = vrot.lane.b32.xlu2 %v344_v39, %s1605_s3 }
 0x6f9   :  { %v346_v40 = vpop.permute.xlu2 %345 }
 0x6fa   :  { %1394 = vmatmul.msk.f32.vlgmr.msrb.gmra.mxu1 %vm113_vm5, %v346_v40 }
 0x6fb   :  { %669 = vmatpush.msrb.mxu1 %v1660_v0 }
 0x6fd   :  { %670 = vmatpush.msrb.mxu1 %v1668_v2 }
 0x6ff   :  { %671 = vmatpush.msrb.mxu1 %v1678_v4 }
 0x701   :  { %672 = vmatpush.msrb.mxu1 %v1698_v9 }
 0x777   :  { %v366_v43 = vpop.f32.mrf.mxu1 }
 0x778   :  { %v369_v44 = vadd.f32 %v366_v43, %v103_v42 }
 0x77a   :  { %1473 = vtanh.f32 %v369_v44  ;;  %v1395_v46 = vmul.f32 -1.442695, %v369_v44 }
 0x77c   :  { %1475 = vpow2.f32 %v1395_v46 }
 0x780   :  { %v1474_v45 = vpop.eup %1473 }
 0x781   :  { %392 = vrot.lane.b32.xlu0 %v1474_v45, %s1604_s13 }
 0x782   :  { %v1476_v47 = vpop.eup %1475 }
 0x783   :  { %v373_v48 = vadd.f32 1.0, %v1476_v47 }
 0x785   :  { %1477 = vrcp.f32 %v373_v48  ;;  %v385_v9 = vand.u32 2147483648, %v373_v48  ;;  %vm379_vm15 = vweird.f32 %v373_v48  ;;  %v383_v18 = vand.u32 2147483647, %v373_v48 }
 0x787   :  { %v386_v52 = vor.u32 1.1754944e-38, %v385_v9  ;;  %vm384_vm1 = vcmp.eq.f32.partialorder %v383_v18, 8.507059e+37 }
 0x78b   :  { %v1478_v0 = vpop.eup %1477 }
 0x78c   :  { %v375_v49 = vmul.f32 %v1478_v0, %v373_v48  ;;  %vm380_vm14 = vweird.f32 %v1478_v0 }
 0x78d   :  { %vm381_vm0 = vmor %vm379_vm15, %vm380_vm14  ;;  %vm178_vm15 = vcmask 1040384  }
 0x78e   :  { %v376_v2 = vsub.f32 1.0, %v375_v49 }
 0x790   :  { %v377_v50 = vmul.f32 %v1478_v0, %v376_v2 }
 0x792   :  { %v378_v4 = vadd.f32 %v1478_v0, %v377_v50 }
 0x794   :  { %v382_v51 = vsel %vm381_vm0, %v1478_v0, %v378_v4 }
 0x795   :  { %v387_v54 = vsel %vm384_vm1, %v386_v52, %v382_v51 }
 0x796   :  { %v390_v56 = vmul.f32 %v387_v54, %v323_v35  ;;  %v104_v35 = vrot.slane %v1782_v3, 2 }
 0x7f3   :  { %v393_v53 = vpop.permute.xlu0 %392 }
 0x7f4   :  { %v395_v55 = vmul.f32 %v393_v53, %v387_v54 }
 0x7f6   :  { %397 = vrot.lane.b32.xlu1 %v395_v55, %s1604_s13 }
 0x868   :  { %v398_v57 = vpop.permute.xlu1 %397 }
 0x869   :  { %v400_v58 = vadd.f32 %v398_v57, %v390_v56 }
 0x86b   :  { %1479 = vtanh.f32 %v400_v58 }
 0x871   :  { %v1480_v59 = vpop.eup %1479 }
 0x872   :  { %403 = vrot.lane.b32.xlu2 %v1480_v59, %s1604_s13  ;;  %v105_v59 = vrot.slane %v1782_v3, 4 }
 0x8cc   :  { %v404_v60 = vpop.permute.xlu2 %403 }
 0x8cd   :  { %v1776_v61 = vmul.f32 %v404_v60, %v387_v54 }
 0x8cf   :  { %420 = vst [vmem:[#allocation1] ss:$4 sm:$0xff] %v1776_v61 }
 0x8d6   :  { %v421_v62 = vld.sshfl [vmem:[#allocation1] sm:$0xff pattern:$0x73625140] }
 0x8d7   :  { %422 = vrot.lane.b32.xlu0 %v421_v62, %s1605_s3 }
 0x949   :  { %v423_v63 = vpop.permute.xlu0 %422 }
 0x94a   :  { %1396 = vmatmul.msk.f32.vlgmr.msrb.gmra.mxu2 %vm113_vm5, %v423_v63 }
 0x9cd   :  { %v443_v5 = vpop.f32.mrf.mxu2 }
 0x9ce   :  { %v446_v6 = vadd.f32 %v443_v5, %v1782_v3 }
 0x9d0   :  { %1481 = vtanh.f32 %v446_v6  ;;  %v1397_v10 = vmul.f32 -1.442695, %v446_v6 }
 0x9d2   :  { %1483 = vpow2.f32 %v1397_v10 }
 0x9d6   :  { %v1482_v8 = vpop.eup %1481 }
 0x9d7   :  { %469 = vrot.lane.b32.xlu1 %v1482_v8, %s1604_s13 }
 0x9d8   :  { %v1484_v11 = vpop.eup %1483 }
 0x9d9   :  { %v450_v12 = vadd.f32 1.0, %v1484_v11 }
 0x9db   :  { %1485 = vrcp.f32 %v450_v12  ;;  %v462_v15 = vand.u32 2147483648, %v450_v12  ;;  %vm456_vm3 = vweird.f32 %v450_v12  ;;  %v460_v21 = vand.u32 2147483647, %v450_v12 }
 0x9dd   :  { %v463_v23 = vor.u32 1.1754944e-38, %v462_v15  ;;  %vm461_vm6 = vcmp.eq.f32.partialorder %v460_v21, 8.507059e+37 }
 0x9e1   :  { %v1486_v14 = vpop.eup %1485 }
 0x9e2   :  { %v452_v16 = vmul.f32 %v1486_v14, %v450_v12  ;;  %vm457_vm2 = vweird.f32 %v1486_v14 }
 0x9e3   :  { %vm458_vm4 = vmor %vm456_vm3, %vm457_vm2 }
 0x9e4   :  { %v453_v17 = vsub.f32 1.0, %v452_v16 }
 0x9e6   :  { %v454_v19 = vmul.f32 %v1486_v14, %v453_v17 }
 0x9e8   :  { %v455_v20 = vadd.f32 %v1486_v14, %v454_v19 }
 0x9ea   :  { %v459_v22 = vsel %vm458_vm4, %v1486_v14, %v455_v20  ;;  %vm186_vm4 = vcmask 253952  }
 0x9eb   :  { %v464_v25 = vsel %vm461_vm6, %v463_v23, %v459_v22 }
 0x9ec   :  { %v467_v27 = vmul.f32 %v464_v25, %v400_v58 }
 0xa49   :  { %v470_v24 = vpop.permute.xlu1 %469 }
 0xa4a   :  { %v472_v26 = vmul.f32 %v470_v24, %v464_v25 }
 0xa4c   :  { %474 = vrot.lane.b32.xlu2 %v472_v26, %s1604_s13 }
 0xaa6   :  { %v475_v28 = vpop.permute.xlu2 %474 }
 0xaa7   :  { %v477_v29 = vadd.f32 %v475_v28, %v467_v27 }
 0xaa9   :  { %1487 = vtanh.f32 %v477_v29 }
 0xaaf   :  { %v1488_v30 = vpop.eup %1487 }
 0xab0   :  { %480 = vrot.lane.b32.xlu0 %v1488_v30, %s1604_s13 }
 0xb22   :  { %v481_v31 = vpop.permute.xlu0 %480 }
 0xb23   :  { %v1788_v32 = vmul.f32 %v481_v31, %v464_v25  ;;  %v106_v31 = vrot.slane %v1782_v3, 6 }
 0xb25   :  { %497 = vst [vmem:[#allocation1] ss:$4 sm:$0xff] %v1788_v32 }
 0xb2c   :  { %v498_v33 = vld.sshfl [vmem:[#allocation1] sm:$0xff pattern:$0x73625140] }
 0xb2d   :  { %499 = vrot.lane.b32.xlu1 %v498_v33, %s1605_s3 }
 0xb9f   :  { %v500_v34 = vpop.permute.xlu1 %499 }
 0xba0   :  { %1398 = vmatmul.msk.f32.vlgmr.msrb.gmra.mxu3 %vm113_vm5, %v500_v34 }
 0xc23   :  { %v520_v36 = vpop.f32.mrf.mxu3 }
 0xc24   :  { %v523_v37 = vadd.f32 %v520_v36, %v104_v35  ;;  %v175_v36 = vpack.c.bf16 %v1745_v41, %v1745_v41 }
 0xc26   :  { %1489 = vtanh.f32 %v523_v37  ;;  %v1399_v40 = vmul.f32 -1.442695, %v523_v37  ;;  %v177_v37 = vrot.slane %v175_v36, 3 }
 0xc28   :  { %1491 = vpow2.f32 %v1399_v40  ;;  %v181_v40 = vsel %vm178_vm15, %v175_v36, %v177_v37  ;;  %v740_v36 = vld [vmem:[%s1948_s5 + $0x8] sm:$0xff]  ;;  %v739_v37 = vld [vmem:[%s1948_s5] sm:$0xff] }
 0xc2c   :  { %v1490_v39 = vpop.eup %1489 }
 0xc2d   :  { %546 = vrot.lane.b32.xlu2 %v1490_v39, %s1604_s13  ;;  %v407_v39 = vpack.c.bf16 %v1776_v61, %v1776_v61 }
 0xc2e   :  { %v1492_v42 = vpop.eup %1491 }
 0xc2f   :  { %v527_v43 = vadd.f32 1.0, %v1492_v42  ;;  %v409_v42 = vrot.slane %v407_v39, 3 }
 0xc31   :  { %1493 = vrcp.f32 %v527_v43  ;;  %v539_v0 = vand.u32 2147483648, %v527_v43  ;;  %vm533_vm8 = vweird.f32 %v527_v43  ;;  %v537_v49 = vand.u32 2147483647, %v527_v43 }
 0xc33   :  { %v540_v50 = vor.u32 1.1754944e-38, %v539_v0  ;;  %vm538_vm10 = vcmp.eq.f32.partialorder %v537_v49, 8.507059e+37 }
 0xc37   :  { %v1494_v44 = vpop.eup %1493 }
 0xc38   :  { %v529_v45 = vmul.f32 %v1494_v44, %v527_v43  ;;  %vm534_vm7 = vweird.f32 %v1494_v44  ;;  %v412_v43 = vsel %vm178_vm15, %v407_v39, %v409_v42  ;;  %v1875_v42 = vld [vmem:[%s1949_s6] ss:$0 sm:$0xff] }
 0xc39   :  { %vm535_vm9 = vmor %vm533_vm8, %vm534_vm7 }
 0xc3a   :  { %v530_v46 = vsub.f32 1.0, %v529_v45 }
 0xc3c   :  { %v531_v47 = vmul.f32 %v1494_v44, %v530_v46 }
 0xc3e   :  { %v532_v48 = vadd.f32 %v1494_v44, %v531_v47 }
 0xc40   :  { %v536_v2 = vsel %vm535_vm9, %v1494_v44, %v532_v48 }
 0xc41   :  { %v541_v9 = vsel %vm538_vm10, %v540_v50, %v536_v2 }
 0xc42   :  { %v544_v51 = vmul.f32 %v541_v9, %v477_v29 }
 0xc87   :  { %v547_v4 = vpop.permute.xlu2 %546 }
 0xc88   :  { %v549_v18 = vmul.f32 %v547_v4, %v541_v9 }
 0xc8a   :  { %551 = vrot.lane.b32.xlu0 %v549_v18, %s1604_s13 }
 0xcfc   :  { %v552_v52 = vpop.permute.xlu0 %551 }
 0xcfd   :  { %v554_v53 = vadd.f32 %v552_v52, %v544_v51 }
 0xcff   :  { %1495 = vtanh.f32 %v554_v53 }
 0xd05   :  { %v1496_v54 = vpop.eup %1495 }
 0xd06   :  { %557 = vrot.lane.b32.xlu1 %v1496_v54, %s1604_s13  ;;  %v253_v54 = vpack.c.bf16 %v1754_v7, %v1754_v7 }
 0xd78   :  { %v558_v55 = vpop.permute.xlu1 %557 }
 0xd79   :  { %v1797_v56 = vmul.f32 %v558_v55, %v541_v9  ;;  %v255_v55 = vrot.slane %v253_v54, 3 }
 0xd7b   :  { %574 = vst [vmem:[#allocation1] ss:$4 sm:$0xff] %v1797_v56 }
 0xd82   :  { %v575_v57 = vld.sshfl [vmem:[#allocation1] sm:$0xff pattern:$0x73625140] }
 0xd83   :  { %576 = vrot.lane.b32.xlu2 %v575_v57, %s1605_s3 }
 0xddd   :  { %v577_v58 = vpop.permute.xlu2 %576 }
 0xdde   :  { %1400 = vmatmul.msk.f32.vlgmr.msra.gmra.mxu1 %vm113_vm5, %v577_v58  ;;  %v484_v58 = vpack.c.bf16 %v1788_v32, %v1788_v32 }
 0xe5b   :  { %v597_v60 = vpop.f32.mrf.mxu1 }
 0xe5c   :  { %v600_v62 = vadd.f32 %v597_v60, %v105_v59  ;;  %v258_v59 = vsel %vm178_vm15, %v253_v54, %v255_v55  ;;  %v486_v60 = vrot.slane %v484_v58, 3 }
 0xe5e   :  { %1497 = vtanh.f32 %v600_v62  ;;  %v1401_v1 = vmul.f32 -1.442695, %v600_v62  ;;  %v489_v7 = vsel %vm178_vm15, %v484_v58, %v486_v60 }
 0xe60   :  { %1499 = vpow2.f32 %v1401_v1 }
 0xe64   :  { %v1498_v63 = vpop.eup %1497 }
 0xe65   :  { %623 = vrot.lane.b32.xlu0 %v1498_v63, %s1604_s13 }
 0xe66   :  { %v1500_v5 = vpop.eup %1499 }
 0xe67   :  { %v604_v6 = vadd.f32 1.0, %v1500_v5 }
 0xe69   :  { %1501 = vrcp.f32 %v604_v6  ;;  %v616_v16 = vand.u32 2147483648, %v604_v6  ;;  %vm610_vm12 = vweird.f32 %v604_v6  ;;  %v614_v17 = vand.u32 2147483647, %v604_v6 }
 0xe6b   :  { %v617_v20 = vor.u32 1.1754944e-38, %v616_v16  ;;  %vm615_vm14 = vcmp.eq.f32.partialorder %v614_v17, 8.507059e+37 }
 0xe6f   :  { %v1502_v8 = vpop.eup %1501 }
 0xe70   :  { %v606_v10 = vmul.f32 %v1502_v8, %v604_v6  ;;  %vm611_vm11 = vweird.f32 %v1502_v8 }
 0xe71   :  { %vm612_vm13 = vmor %vm610_vm12, %vm611_vm11 }
 0xe72   :  { %v607_v11 = vsub.f32 1.0, %v606_v10 }
 0xe74   :  { %v608_v12 = vmul.f32 %v1502_v8, %v607_v11 }
 0xe76   :  { %v609_v14 = vadd.f32 %v1502_v8, %v608_v12 }
 0xe78   :  { %v613_v19 = vsel %vm612_vm13, %v1502_v8, %v609_v14  ;;  %v330_v14 = vpack.c.bf16 %v1763_v38, %v1763_v38 }
 0xe79   :  { %v618_v21 = vsel %vm615_vm14, %v617_v20, %v613_v19  ;;  %v561_v20 = vpack.c.bf16 %v1797_v56, %v1797_v56 }
 0xe7a   :  { %v621_v23 = vmul.f32 %v618_v21, %v554_v53  ;;  %v332_v16 = vrot.slane %v330_v14, 3 }
 0xed7   :  { %v624_v15 = vpop.permute.xlu0 %623 }
 0xed8   :  { %v626_v22 = vmul.f32 %v624_v15, %v618_v21  ;;  %v335_v15 = vsel %vm178_vm15, %v330_v14, %v332_v16 }
 0xeda   :  { %628 = vrot.lane.b32.xlu1 %v626_v22, %s1604_s13 }
 0xf4c   :  { %v629_v24 = vpop.permute.xlu1 %628 }
 0xf4d   :  { %v1805_v25 = vadd.f32 %v629_v24, %v621_v23 }
 0xf4f   :  { %1503 = vtanh.f32 %v1805_v25 }
 0xf55   :  { %v1504_v26 = vpop.eup %1503 }
 0xf56   :  { %634 = vrot.lane.b32.xlu2 %v1504_v26, %s1604_s13 }
 0xfb0   :  { %v635_v27 = vpop.permute.xlu2 %634 }
 0xfb1   :  { %v637_v28 = vmul.f32 %v635_v27, %v618_v21  ;;  %v563_v21 = vrot.slane %v561_v20, 3 }
 0xfb3   :  { %651 = vst [vmem:[#allocation1] ss:$4 sm:$0xff] %v637_v28  ;;  %v638_v3 = vpack.c.bf16 %v637_v28, %v637_v28  ;;  %v566_v38 = vsel %vm178_vm15, %v561_v20, %v563_v21 }
 0xfb5   :  { %v640_v44 = vrot.slane %v638_v3, 3 }
 0xfb7   :  { %v643_v41 = vsel %vm178_vm15, %v638_v3, %v640_v44 }
 0xfba   :  { %v652_v29 = vld.sshfl [vmem:[#allocation1] sm:$0xff pattern:$0x73625140] }
 0xfbb   :  { %653 = vrot.lane.b32.xlu0 %v652_v29, %s1605_s3 }
0x102d   :  { %v654_v30 = vpop.permute.xlu0 %653 }
0x102e   :  { %1402 = vmatmul.msk.f32.vlgmr.msrb.gmra.mxu1 %vm113_vm5, %v654_v30 }
0x10ab   :  { %v674_v33 = vpop.f32.mrf.mxu1 }
0x10ac   :  { %v677_v34 = vadd.f32 %v674_v33, %v106_v31  ;;  %v1439_v31 = vld [vmem:[%s1947_s4 + $0x8] sm:$0xff]  ;;  %v742_v33 = vld [vmem:[%s1948_s5 + $0x18] sm:$0xff] }
0x10ad   :  { %825 = vmatpush.msra.mxu3 %v742_v33  ;;  %890 = vmatpush.msrb.mxu0 %v742_v33 }
0x10ae   :  { %1505 = vtanh.f32 %v677_v34  ;;  %v1403_v45 = vmul.f32 -1.442695, %v677_v34  ;;  %v741_v34 = vld [vmem:[%s1948_s5 + $0x10] sm:$0xff]  ;;  %791 = vmatpush.bf16.msra.mxu2 %v1439_v31  ;;  %955 = vmatpush.msra.mxu1 %v742_v33 }
0x10af   :  { %826 = vmatpush.msra.mxu3 %v741_v34  ;;  %891 = vmatpush.msrb.mxu0 %v741_v34 }
0x10b0   :  { %1507 = vpow2.f32 %v1403_v45  ;;  %956 = vmatpush.msra.mxu1 %v741_v34 }
0x10b1   :  { %827 = vmatpush.msra.mxu3 %v740_v36  ;;  %892 = vmatpush.msrb.mxu0 %v740_v36 }
0x10b2   :  { %957 = vmatpush.msra.mxu1 %v740_v36 }
0x10b3   :  { %828 = vmatpush.msra.mxu3 %v739_v37  ;;  %893 = vmatpush.msrb.mxu0 %v739_v37 }
0x10b4   :  { %v1506_v35 = vpop.eup %1505  ;;  %829 = vmatmul.f32.vlgmr.msra.gmra.mxu3 %v1603_v13  ;;  %958 = vmatpush.msra.mxu1 %v739_v37 }
0x10b5   :  { %700 = vrot.lane.b32.xlu1 %v1506_v35, %s1604_s13  ;;  %v1438_v35 = vld [vmem:[%s1947_s4] sm:$0xff]  ;;  %1020 = vmatpush.msrb.mxu3 %v742_v33 }
0x10b6   :  { %v1508_v46 = vpop.eup %1507  ;;  %792 = vmatpush.bf16.msra.mxu2 %v1438_v35  ;;  %1085 = vmatpush.msra.mxu0 %v742_v33 }
0x10b7   :  { %v681_v47 = vadd.f32 1.0, %v1508_v46  ;;  %1150 = vmatpush.msrb.mxu1 %v742_v33  ;;  %1021 = vmatpush.msrb.mxu3 %v741_v34 }
0x10b8   :  { %1086 = vmatpush.msra.mxu0 %v741_v34 }
0x10b9   :  { %1509 = vrcp.f32 %v681_v47  ;;  %v693_v50 = vand.u32 2147483648, %v681_v47  ;;  %vm687_vm1 = vweird.f32 %v681_v47  ;;  %v691_v4 = vand.u32 2147483647, %v681_v47  ;;  %1151 = vmatpush.msrb.mxu1 %v741_v34  ;;  %1022 = vmatpush.msrb.mxu3 %v740_v36 }
0x10ba   :  { %1215 = vmatpush.msrb.mxu2 %v742_v33  ;;  %1087 = vmatpush.msra.mxu0 %v740_v36 }
0x10bb   :  { %v694_v18 = vor.u32 1.1754944e-38, %v693_v50  ;;  %vm692_vm3 = vcmp.eq.f32.partialorder %v691_v4, 8.507059e+37  ;;  %1152 = vmatpush.msrb.mxu1 %v740_v36  ;;  %1023 = vmatpush.msrb.mxu3 %v739_v37 }
0x10bc   :  { %1216 = vmatpush.msrb.mxu2 %v741_v34  ;;  %1088 = vmatpush.msra.mxu0 %v739_v37 }
0x10bd   :  { %183 = vrot.lane.b32.xlu1 %v181_v40, %s1605_s3  ;;  %1153 = vmatpush.msrb.mxu1 %v739_v37 }
0x10be   :  { %1217 = vmatpush.msrb.mxu2 %v740_v36  ;;  %1280 = vmatpush.msra.mxu3 %v742_v33 }
0x10bf   :  { %v1510_v61 = vpop.eup %1509 }
0x10c0   :  { %v683_v48 = vmul.f32 %v1510_v61, %v681_v47  ;;  %vm688_vm0 = vweird.f32 %v1510_v61  ;;  %1218 = vmatpush.msrb.mxu2 %v739_v37  ;;  %1281 = vmatpush.msra.mxu3 %v741_v34 }
0x10c1   :  { %vm689_vm2 = vmor %vm687_vm1, %vm688_vm0 }
0x10c2   :  { %v684_v0 = vsub.f32 1.0, %v683_v48  ;;  %1282 = vmatpush.msra.mxu3 %v740_v36 }
0x10c4   :  { %v685_v49 = vmul.f32 %v1510_v61, %v684_v0  ;;  %1283 = vmatpush.msra.mxu3 %v739_v37 }
0x10c5   :  { %414 = vrot.lane.b32.xlu1 %v412_v43, %s1605_s3 }
0x10c6   :  { %v686_v2 = vadd.f32 %v1510_v61, %v685_v49 }
0x10c8   :  { %v690_v9 = vsel %vm689_vm2, %v1510_v61, %v686_v2 }
0x10c9   :  { %v695_v52 = vsel %vm692_vm3, %v694_v18, %v690_v9 }
0x10ca   :  { %v698_v6 = vmul.f32 %v695_v52, %v1805_v25 }
0x10cd   :  { %645 = vrot.lane.b32.xlu1 %v643_v41, %s1605_s3 }
0x1127   :  { %v701_v51 = vpop.permute.xlu1 %700 }
0x1128   :  { %v703_v53 = vmul.f32 %v701_v51, %v695_v52 }
0x112a   :  { %705 = vrot.lane.b32.xlu2 %v703_v53, %s1604_s13 }
0x112f   :  { %v184_v57 = vpop.permute.xlu1 %183 }
0x1130   :  { %187 = vst.msk [vmem:[#allocation2] sm:$0x1] %vm186_vm4, %v184_v57 }
0x1132   :  { %260 = vrot.lane.b32.xlu2 %v258_v59, %s1605_s3 }
0x1137   :  { %v727_v62 = vld [vmem:[#allocation2] sm:$0x1]  ;;  %v415_v63 = vpop.permute.xlu1 %414  ;;  %v830_v43 = vpop.f32.mrf.mxu3 }
0x1138   :  { %748 = vst [vmem:[#allocation1] ss:$9 sm:$0xff] %v727_v62 }
0x1139   :  { %418 = vst.msk [vmem:[#allocation2 + $0x3] sm:$0x1] %vm186_vm4, %v415_v63 }
0x113a   :  { %491 = vrot.lane.b32.xlu2 %v489_v7, %s1605_s3 }
0x113f   :  { %v646_v1 = vpop.permute.xlu1 %645 }
0x1140   :  { %v730_v5 = vld [vmem:[#allocation2 + $0x3] sm:$0x1]  ;;  %649 = vst.msk [vmem:[#allocation2 + $0x6] sm:$0x1] %vm186_vm4, %v646_v1 }
0x1141   :  { %757 = vst [vmem:[#allocation1 + $0x3] ss:$9 sm:$0xff] %v730_v5 }
0x1147   :  { %v733_v32 = vld [vmem:[#allocation2 + $0x6] sm:$0x1] }
0x1148   :  { %766 = vst [vmem:[#allocation1 + $0x6] ss:$9 sm:$0xff] %v733_v32 }
0x1184   :  { %v706_v8 = vpop.permute.xlu2 %705 }
0x1185   :  { %v708_v10 = vadd.f32 %v706_v8, %v698_v6 }
0x1187   :  { %1511 = vtanh.f32 %v708_v10 }
0x118c   :  { %v261_v11 = vpop.permute.xlu2 %260 }
0x118d   :  { %v1512_v12 = vpop.eup %1511  ;;  %264 = vst.msk [vmem:[#allocation2 + $0x1] sm:$0x1] %vm186_vm4, %v261_v11 }
0x118e   :  { %711 = vrot.lane.b32.xlu0 %v1512_v12, %s1604_s13 }
0x1194   :  { %v728_v17 = vld [vmem:[#allocation2 + $0x1] sm:$0x1]  ;;  %v492_v19 = vpop.permute.xlu2 %491 }
0x1195   :  { %751 = vst [vmem:[#allocation1 + $0x1] ss:$9 sm:$0xff] %v728_v17 }
0x1196   :  { %495 = vst.msk [vmem:[#allocation2 + $0x4] sm:$0x1] %vm186_vm4, %v492_v19  ;;  %337 = vrot.lane.b32.xlu0 %v335_v15, %s1605_s3 }
0x119d   :  { %v731_v22 = vld [vmem:[#allocation2 + $0x4] sm:$0x1] }
0x119e   :  { %760 = vst [vmem:[#allocation1 + $0x4] ss:$9 sm:$0xff] %v731_v22  ;;  %568 = vrot.lane.b32.xlu0 %v566_v38, %s1605_s3 }
0x1200   :  { %v712_v23 = vpop.permute.xlu0 %711 }
0x1201   :  { %v714_v24 = vmul.f32 %v712_v23, %v695_v52 }
0x1203   :  { %v715_v25 = vpack.c.bf16 %v714_v24, %v714_v24 }
0x1205   :  { %v717_v26 = vrot.slane %v715_v25, 3 }
0x1207   :  { %v720_v56 = vsel %vm178_vm15, %v715_v25, %v717_v26 }
0x1208   :  { %v338_v27 = vpop.permute.xlu0 %337  ;;  %722 = vrot.lane.b32.xlu2 %v720_v56, %s1605_s3 }
0x1209   :  { %341 = vst.msk [vmem:[#allocation2 + $0x2] sm:$0x1] %vm186_vm4, %v338_v27 }
0x1210   :  { %v729_v28 = vld [vmem:[#allocation2 + $0x2] sm:$0x1]  ;;  %v569_v29 = vpop.permute.xlu0 %568 }
0x1211   :  { %754 = vst [vmem:[#allocation1 + $0x2] ss:$9 sm:$0xff] %v729_v28 }
0x1212   :  { %572 = vst.msk [vmem:[#allocation2 + $0x5] sm:$0x1] %vm186_vm4, %v569_v29 }
0x1219   :  { %v732_v30 = vld [vmem:[#allocation2 + $0x5] sm:$0x1] }
0x121a   :  { %763 = vst [vmem:[#allocation1 + $0x5] ss:$9 sm:$0xff] %v732_v30 }
0x1262   :  { %v723_v13 = vpop.permute.xlu2 %722 }
0x1263   :  { %726 = vst.msk [vmem:[#allocation2 + $0x7] sm:$0x1] %vm186_vm4, %v723_v13 }
0x126a   :  { %v734_v39 = vld [vmem:[#allocation2 + $0x7] sm:$0x1] }
0x126b   :  { %769 = vst [vmem:[#allocation1 + $0x7] ss:$9 sm:$0xff] %v734_v39 }
0x1272   :  { %v770_v40 = vld [vmem:[#allocation1] sm:$0xff] }
0x1273   :  { %1412 = vmatmul.msk.bf16.vlgmr.msra.gmra.mxu2 %vm113_vm5, %v770_v40 }
0x12f6   :  { %v794_v3 = vpop.f32.mrf.mxu2 }
0x12f7   :  { %v1878_v44 = vadd.f32 %v1875_v42, %v794_v3 }
0x12f9   :  { %v833_v41 = vadd.f32 %v830_v43, %v1878_v44  ;;  %v801_v1 = vrot.slane %v1878_v44, 2  ;;  %v802_v33 = vrot.slane %v1878_v44, 4 }
0x12fb   :  { %1513 = vtanh.f32 %v833_v41  ;;  %v1413_v46 = vmul.f32 -1.442695, %v833_v41 }
0x12fd   :  { %1515 = vpow2.f32 %v1413_v46 }
0x1301   :  { %v1514_v45 = vpop.eup %1513 }
0x1302   :  { %856 = vrot.lane.b32.xlu0 %v1514_v45, %s1604_s13 }
0x1303   :  { %v1516_v47 = vpop.eup %1515 }
0x1304   :  { %v837_v61 = vadd.f32 1.0, %v1516_v47 }
0x1306   :  { %1517 = vrcp.f32 %v837_v61  ;;  %v849_v4 = vand.u32 2147483648, %v837_v61  ;;  %vm843_vm7 = vweird.f32 %v837_v61  ;;  %v847_v9 = vand.u32 2147483647, %v837_v61 }
0x1308   :  { %v850_v51 = vor.u32 1.1754944e-38, %v849_v4  ;;  %vm848_vm9 = vcmp.eq.f32.partialorder %v847_v9, 8.507059e+37 }
0x130c   :  { %v1518_v48 = vpop.eup %1517 }
0x130d   :  { %v839_v0 = vmul.f32 %v1518_v48, %v837_v61  ;;  %vm844_vm6 = vweird.f32 %v1518_v48 }
0x130e   :  { %vm845_vm8 = vmor %vm843_vm7, %vm844_vm6 }
0x130f   :  { %v840_v49 = vsub.f32 1.0, %v839_v0 }
0x1311   :  { %v841_v2 = vmul.f32 %v1518_v48, %v840_v49 }
0x1313   :  { %v842_v50 = vadd.f32 %v1518_v48, %v841_v2 }
0x1315   :  { %v846_v18 = vsel %vm845_vm8, %v1518_v48, %v842_v50 }
0x1316   :  { %v851_v53 = vsel %vm848_vm9, %v850_v51, %v846_v18 }
0x1317   :  { %v854_v55 = vmul.f32 0.0, %v851_v53 }
0x1374   :  { %v857_v52 = vpop.permute.xlu0 %856 }
0x1375   :  { %v859_v54 = vmul.f32 %v857_v52, %v851_v53 }
0x1377   :  { %861 = vrot.lane.b32.xlu1 %v859_v54, %s1604_s13 }
0x13e9   :  { %v862_v57 = vpop.permute.xlu1 %861 }
0x13ea   :  { %v864_v58 = vadd.f32 %v862_v57, %v854_v55  ;;  %v803_v55 = vrot.slane %v1878_v44, 6 }
0x13ec   :  { %1519 = vtanh.f32 %v864_v58 }
0x13f2   :  { %v1520_v59 = vpop.eup %1519 }
0x13f3   :  { %867 = vrot.lane.b32.xlu2 %v1520_v59, %s1604_s13 }
0x144d   :  { %v868_v60 = vpop.permute.xlu2 %867 }
0x144e   :  { %v870_v62 = vmul.f32 %v868_v60, %v851_v53 }
0x1450   :  { %872 = vst [vmem:[#allocation1] ss:$4 sm:$0xff] %v870_v62 }
0x1457   :  { %v873_v63 = vld.sshfl [vmem:[#allocation1] sm:$0xff pattern:$0x73625140] }
0x1458   :  { %874 = vrot.lane.b32.xlu0 %v873_v63, %s1605_s3 }
0x14ca   :  { %v875_v7 = vpop.permute.xlu0 %874 }
0x14cb   :  { %1414 = vmatmul.msk.f32.vlgmr.msrb.gmra.mxu0 %vm113_vm5, %v875_v7 }
0x1548   :  { %v895_v5 = vpop.f32.mrf.mxu0 }
0x1549   :  { %v898_v32 = vadd.f32 %v895_v5, %v801_v1 }
0x154b   :  { %1521 = vtanh.f32 %v898_v32  ;;  %v1415_v8 = vmul.f32 -1.442695, %v898_v32 }
0x154d   :  { %1523 = vpow2.f32 %v1415_v8 }
0x1551   :  { %v1522_v6 = vpop.eup %1521 }
0x1552   :  { %921 = vrot.lane.b32.xlu1 %v1522_v6, %s1604_s13 }
0x1553   :  { %v1524_v10 = vpop.eup %1523 }
0x1554   :  { %v902_v11 = vadd.f32 1.0, %v1524_v10 }
0x1556   :  { %1525 = vrcp.f32 %v902_v11  ;;  %v914_v20 = vand.u32 2147483648, %v902_v11  ;;  %vm908_vm11 = vweird.f32 %v902_v11  ;;  %v912_v15 = vand.u32 2147483647, %v902_v11 }
0x1558   :  { %v915_v22 = vor.u32 1.1754944e-38, %v914_v20  ;;  %vm913_vm13 = vcmp.eq.f32.partialorder %v912_v15, 8.507059e+37 }
0x155c   :  { %v1526_v12 = vpop.eup %1525 }
0x155d   :  { %v904_v14 = vmul.f32 %v1526_v12, %v902_v11  ;;  %vm909_vm10 = vweird.f32 %v1526_v12 }
0x155e   :  { %vm910_vm12 = vmor %vm908_vm11, %vm909_vm10 }
0x155f   :  { %v905_v16 = vsub.f32 1.0, %v904_v14 }
0x1561   :  { %v906_v17 = vmul.f32 %v1526_v12, %v905_v16 }
0x1563   :  { %v907_v19 = vadd.f32 %v1526_v12, %v906_v17 }
0x1565   :  { %v911_v21 = vsel %vm910_vm12, %v1526_v12, %v907_v19 }
0x1566   :  { %v916_v23 = vsel %vm913_vm13, %v915_v22, %v911_v21 }
0x1567   :  { %v919_v25 = vmul.f32 %v916_v23, %v864_v58 }
0x15c4   :  { %v922_v38 = vpop.permute.xlu1 %921 }
0x15c5   :  { %v924_v24 = vmul.f32 %v922_v38, %v916_v23 }
0x15c7   :  { %926 = vrot.lane.b32.xlu2 %v924_v24, %s1604_s13  ;;  %v796_v24 = vpop.f32.mrf.mxu2 }
0x1621   :  { %v927_v26 = vpop.permute.xlu2 %926 }
0x1622   :  { %v929_v56 = vadd.f32 %v927_v26, %v919_v25  ;;  %v1905_v25 = vadd.f32 %v1875_v42, %v796_v24 }
0x1624   :  { %1527 = vtanh.f32 %v929_v56 }
0x162a   :  { %v1528_v27 = vpop.eup %1527 }
0x162b   :  { %932 = vrot.lane.b32.xlu0 %v1528_v27, %s1604_s13 }
0x169d   :  { %v933_v28 = vpop.permute.xlu0 %932 }
0x169e   :  { %v935_v29 = vmul.f32 %v933_v28, %v916_v23 }
0x16a0   :  { %937 = vst [vmem:[#allocation1] ss:$4 sm:$0xff] %v935_v29 }
0x16a7   :  { %v938_v30 = vld.sshfl [vmem:[#allocation1] sm:$0xff pattern:$0x73625140] }
0x16a8   :  { %939 = vrot.lane.b32.xlu1 %v938_v30, %s1605_s3 }
0x171a   :  { %v940_v31 = vpop.permute.xlu1 %939 }
0x171b   :  { %1416 = vmatmul.msk.f32.vlgmr.msra.gmra.mxu1 %vm113_vm5, %v940_v31 }
0x1798   :  { %v960_v34 = vpop.f32.mrf.mxu1 }
0x1799   :  { %v963_v35 = vadd.f32 %v960_v34, %v802_v33 }
0x179b   :  { %1529 = vtanh.f32 %v963_v35  ;;  %v1417_v37 = vmul.f32 -1.442695, %v963_v35 }
0x179d   :  { %1531 = vpow2.f32 %v1417_v37 }
0x17a1   :  { %v1530_v36 = vpop.eup %1529 }
0x17a2   :  { %986 = vrot.lane.b32.xlu2 %v1530_v36, %s1604_s13 }
0x17a3   :  { %v1532_v13 = vpop.eup %1531 }
0x17a4   :  { %v967_v39 = vadd.f32 1.0, %v1532_v13 }
0x17a6   :  { %1533 = vrcp.f32 %v967_v39  ;;  %v979_v46 = vand.u32 2147483648, %v967_v39  ;;  %vm973_vm15 = vweird.f32 %v967_v39  ;;  %v977_v47 = vand.u32 2147483647, %v967_v39 }
0x17a8   :  { %v980_v48 = vor.u32 1.1754944e-38, %v979_v46  ;;  %vm978_vm1 = vcmp.eq.f32.partialorder %v977_v47, 8.507059e+37 }
0x17ac   :  { %v1534_v40 = vpop.eup %1533 }
0x17ad   :  { %v969_v3 = vmul.f32 %v1534_v40, %v967_v39  ;;  %vm974_vm14 = vweird.f32 %v1534_v40 }
0x17ae   :  { %vm975_vm0 = vmor %vm973_vm15, %vm974_vm14 }
0x17af   :  { %v970_v43 = vsub.f32 1.0, %v969_v3 }
0x17b1   :  { %v971_v41 = vmul.f32 %v1534_v40, %v970_v43 }
0x17b3   :  { %v972_v45 = vadd.f32 %v1534_v40, %v971_v41 }
0x17b5   :  { %v976_v61 = vsel %vm975_vm0, %v1534_v40, %v972_v45 }
0x17b6   :  { %v981_v49 = vsel %vm978_vm1, %v980_v48, %v976_v61 }
0x17b7   :  { %v984_v50 = vmul.f32 %v981_v49, %v929_v56 }
0x17fc   :  { %v987_v0 = vpop.permute.xlu2 %986 }
0x17fd   :  { %v989_v2 = vmul.f32 %v987_v0, %v981_v49 }
0x17ff   :  { %991 = vrot.lane.b32.xlu0 %v989_v2, %s1604_s13  ;;  %v804_v2 = vrot.slane %v1905_v25, 2 }
0x1871   :  { %v992_v4 = vpop.permute.xlu0 %991 }
0x1872   :  { %v994_v9 = vadd.f32 %v992_v4, %v984_v50 }
0x1874   :  { %1535 = vtanh.f32 %v994_v9 }
0x187a   :  { %v1536_v18 = vpop.eup %1535 }
0x187b   :  { %997 = vrot.lane.b32.xlu1 %v1536_v18, %s1604_s13 }
0x18ed   :  { %v998_v51 = vpop.permute.xlu1 %997 }
0x18ee   :  { %v1000_v52 = vmul.f32 %v998_v51, %v981_v49 }
0x18f0   :  { %1002 = vst [vmem:[#allocation1] ss:$4 sm:$0xff] %v1000_v52 }
0x18f7   :  { %v1003_v53 = vld.sshfl [vmem:[#allocation1] sm:$0xff pattern:$0x73625140] }
0x18f8   :  { %1004 = vrot.lane.b32.xlu2 %v1003_v53, %s1605_s3 }
0x1952   :  { %v1005_v54 = vpop.permute.xlu2 %1004 }
0x1953   :  { %1418 = vmatmul.msk.f32.vlgmr.msrb.gmra.mxu3 %vm113_vm5, %v1005_v54 }
0x19d6   :  { %v1025_v57 = vpop.f32.mrf.mxu3 }
0x19d7   :  { %v1028_v58 = vadd.f32 %v1025_v57, %v803_v55 }
0x19d9   :  { %1537 = vtanh.f32 %v1028_v58  ;;  %v1419_v60 = vmul.f32 -1.442695, %v1028_v58 }
0x19db   :  { %1539 = vpow2.f32 %v1419_v60 }
0x19df   :  { %v1538_v59 = vpop.eup %1537 }
0x19e0   :  { %1051 = vrot.lane.b32.xlu0 %v1538_v59, %s1604_s13 }
0x19e1   :  { %v1540_v62 = vpop.eup %1539 }
0x19e2   :  { %v1032_v63 = vadd.f32 1.0, %v1540_v62 }
0x19e4   :  { %1541 = vrcp.f32 %v1032_v63  ;;  %v1044_v8 = vand.u32 2147483648, %v1032_v63  ;;  %vm1038_vm3 = vweird.f32 %v1032_v63  ;;  %v1042_v44 = vand.u32 2147483647, %v1032_v63 }
0x19e6   :  { %v1045_v11 = vor.u32 1.1754944e-38, %v1044_v8  ;;  %vm1043_vm6 = vcmp.eq.f32.partialorder %v1042_v44, 8.507059e+37 }
0x19ea   :  { %v1542_v7 = vpop.eup %1541 }
0x19eb   :  { %v1034_v1 = vmul.f32 %v1542_v7, %v1032_v63  ;;  %vm1039_vm2 = vweird.f32 %v1542_v7 }
0x19ec   :  { %vm1040_vm4 = vmor %vm1038_vm3, %vm1039_vm2 }
0x19ed   :  { %v1035_v5 = vsub.f32 1.0, %v1034_v1 }
0x19ef   :  { %v1036_v32 = vmul.f32 %v1542_v7, %v1035_v5 }
0x19f1   :  { %v1037_v6 = vadd.f32 %v1542_v7, %v1036_v32 }
0x19f3   :  { %v1041_v10 = vsel %vm1040_vm4, %v1542_v7, %v1037_v6 }
0x19f4   :  { %v1046_v14 = vsel %vm1043_vm6, %v1045_v11, %v1041_v10 }
0x19f5   :  { %v1049_v17 = vmul.f32 %v1046_v14, %v994_v9 }
0x1a52   :  { %v1052_v12 = vpop.permute.xlu0 %1051 }
0x1a53   :  { %v1054_v16 = vmul.f32 %v1052_v12, %v1046_v14 }
0x1a55   :  { %1056 = vrot.lane.b32.xlu1 %v1054_v16, %s1604_s13  ;;  %v805_v16 = vrot.slane %v1905_v25, 4 }
0x1ac7   :  { %v1057_v19 = vpop.permute.xlu1 %1056 }
0x1ac8   :  { %v1059_v20 = vadd.f32 %v1057_v19, %v1049_v17 }
0x1aca   :  { %1543 = vtanh.f32 %v1059_v20 }
0x1ad0   :  { %v1544_v15 = vpop.eup %1543 }
0x1ad1   :  { %1062 = vrot.lane.b32.xlu2 %v1544_v15, %s1604_s13 }
0x1b2b   :  { %v1063_v21 = vpop.permute.xlu2 %1062 }
0x1b2c   :  { %v1065_v22 = vmul.f32 %v1063_v21, %v1046_v14 }
0x1b2e   :  { %1067 = vst [vmem:[#allocation1] ss:$4 sm:$0xff] %v1065_v22 }
0x1b35   :  { %v1068_v38 = vld.sshfl [vmem:[#allocation1] sm:$0xff pattern:$0x73625140] }
0x1b36   :  { %1069 = vrot.lane.b32.xlu0 %v1068_v38, %s1605_s3 }
0x1ba8   :  { %v1070_v23 = vpop.permute.xlu0 %1069 }
0x1ba9   :  { %1420 = vmatmul.msk.f32.vlgmr.msra.gmra.mxu0 %vm113_vm5, %v1070_v23 }
0x1c26   :  { %v1090_v26 = vpop.f32.mrf.mxu0 }
0x1c27   :  { %v1093_v56 = vadd.f32 %v1090_v26, %v1905_v25 }
0x1c29   :  { %1545 = vtanh.f32 %v1093_v56  ;;  %v1421_v28 = vmul.f32 -1.442695, %v1093_v56 }
0x1c2b   :  { %1547 = vpow2.f32 %v1421_v28 }
0x1c2f   :  { %v1546_v27 = vpop.eup %1545 }
0x1c30   :  { %1116 = vrot.lane.b32.xlu1 %v1546_v27, %s1604_s13 }
0x1c31   :  { %v1548_v29 = vpop.eup %1547 }
0x1c32   :  { %v1097_v30 = vadd.f32 1.0, %v1548_v29 }
0x1c34   :  { %1549 = vrcp.f32 %v1097_v30  ;;  %v1109_v42 = vand.u32 2147483648, %v1097_v30  ;;  %vm1103_vm8 = vweird.f32 %v1097_v30  ;;  %v1107_v37 = vand.u32 2147483647, %v1097_v30 }
0x1c36   :  { %v1110_v39 = vor.u32 1.1754944e-38, %v1109_v42  ;;  %vm1108_vm10 = vcmp.eq.f32.partialorder %v1107_v37, 8.507059e+37 }
0x1c3a   :  { %v1550_v31 = vpop.eup %1549 }
0x1c3b   :  { %v1099_v33 = vmul.f32 %v1550_v31, %v1097_v30  ;;  %vm1104_vm7 = vweird.f32 %v1550_v31 }
0x1c3c   :  { %vm1105_vm9 = vmor %vm1103_vm8, %vm1104_vm7  ;;  %vm1366_vm8 = vcmask 25600  }
0x1c3d   :  { %v1100_v34 = vsub.f32 1.0, %v1099_v33 }
0x1c3f   :  { %v1101_v35 = vmul.f32 %v1550_v31, %v1100_v34 }
0x1c41   :  { %v1102_v36 = vadd.f32 %v1550_v31, %v1101_v35 }
0x1c43   :  { %v1106_v13 = vsel %vm1105_vm9, %v1550_v31, %v1102_v36 }
0x1c44   :  { %v1111_v3 = vsel %vm1108_vm10, %v1110_v39, %v1106_v13 }
0x1c45   :  { %v1114_v41 = vmul.f32 %v1111_v3, %v1059_v20 }
0x1ca2   :  { %v1117_v40 = vpop.permute.xlu1 %1116 }
0x1ca3   :  { %v1119_v43 = vmul.f32 %v1117_v40, %v1111_v3 }
0x1ca5   :  { %1121 = vrot.lane.b32.xlu2 %v1119_v43, %s1604_s13  ;;  %v806_v43 = vrot.slane %v1905_v25, 6 }
0x1cff   :  { %v1122_v45 = vpop.permute.xlu2 %1121 }
0x1d00   :  { %v1124_v46 = vadd.f32 %v1122_v45, %v1114_v41 }
0x1d02   :  { %1551 = vtanh.f32 %v1124_v46 }
0x1d08   :  { %v1552_v47 = vpop.eup %1551 }
0x1d09   :  { %1127 = vrot.lane.b32.xlu0 %v1552_v47, %s1604_s13 }
0x1d7b   :  { %v1128_v61 = vpop.permute.xlu0 %1127 }
0x1d7c   :  { %v1130_v48 = vmul.f32 %v1128_v61, %v1111_v3 }
0x1d7e   :  { %1132 = vst [vmem:[#allocation1] ss:$4 sm:$0xff] %v1130_v48 }
0x1d85   :  { %v1133_v0 = vld.sshfl [vmem:[#allocation1] sm:$0xff pattern:$0x73625140] }
0x1d86   :  { %1134 = vrot.lane.b32.xlu1 %v1133_v0, %s1605_s3 }
0x1df8   :  { %v1135_v49 = vpop.permute.xlu1 %1134 }
0x1df9   :  { %1422 = vmatmul.msk.f32.vlgmr.msrb.gmra.mxu1 %vm113_vm5, %v1135_v49 }
0x1e76   :  { %v1155_v50 = vpop.f32.mrf.mxu1 }
0x1e77   :  { %v1158_v4 = vadd.f32 %v1155_v50, %v804_v2 }
0x1e79   :  { %1553 = vtanh.f32 %v1158_v4  ;;  %v1423_v18 = vmul.f32 -1.442695, %v1158_v4 }
0x1e7b   :  { %1555 = vpow2.f32 %v1423_v18 }
0x1e7f   :  { %v1554_v9 = vpop.eup %1553 }
0x1e80   :  { %1181 = vrot.lane.b32.xlu2 %v1554_v9, %s1604_s13 }
0x1e81   :  { %v1556_v51 = vpop.eup %1555 }
0x1e82   :  { %v1162_v52 = vadd.f32 1.0, %v1556_v51 }
0x1e84   :  { %1557 = vrcp.f32 %v1162_v52  ;;  %v1174_v59 = vand.u32 2147483648, %v1162_v52  ;;  %vm1168_vm12 = vweird.f32 %v1162_v52  ;;  %v1172_v60 = vand.u32 2147483647, %v1162_v52 }
0x1e86   :  { %v1175_v63 = vor.u32 1.1754944e-38, %v1174_v59  ;;  %vm1173_vm14 = vcmp.eq.f32.partialorder %v1172_v60, 8.507059e+37  ;;  %v1441_v60 = vld [vmem:[%s1950_s7 + $0x8] sm:$0xff] }
0x1e87   :  { %1359 = vmatpush.bf16.msrb.mxu0 %v1441_v60 }
0x1e8a   :  { %v1558_v53 = vpop.eup %1557 }
0x1e8b   :  { %v1164_v54 = vmul.f32 %v1558_v53, %v1162_v52  ;;  %vm1169_vm11 = vweird.f32 %v1558_v53 }
0x1e8c   :  { %vm1170_vm13 = vmor %vm1168_vm12, %vm1169_vm11 }
0x1e8d   :  { %v1165_v55 = vsub.f32 1.0, %v1164_v54 }
0x1e8f   :  { %v1166_v57 = vmul.f32 %v1558_v53, %v1165_v55 }
0x1e91   :  { %v1167_v58 = vadd.f32 %v1558_v53, %v1166_v57 }
0x1e93   :  { %v1171_v62 = vsel %vm1170_vm13, %v1558_v53, %v1167_v58 }
0x1e94   :  { %v1176_v1 = vsel %vm1173_vm14, %v1175_v63, %v1171_v62  ;;  %v1440_v62 = vld [vmem:[%s1950_s7] sm:$0xff] }
0x1e95   :  { %v1179_v32 = vmul.f32 %v1176_v1, %v1124_v46  ;;  %1360 = vmatpush.bf16.msrb.mxu0 %v1440_v62 }
0x1eda   :  { %v1182_v7 = vpop.permute.xlu2 %1181 }
0x1edb   :  { %v1184_v5 = vmul.f32 %v1182_v7, %v1176_v1 }
0x1edd   :  { %1186 = vrot.lane.b32.xlu0 %v1184_v5, %s1604_s13 }
0x1f4f   :  { %v1187_v6 = vpop.permute.xlu0 %1186 }
0x1f50   :  { %v1189_v8 = vadd.f32 %v1187_v6, %v1179_v32  ;;  %v1448_v32 = vld [vmem:[%s1951_s8] ss:$0 sm:$0xff] }
0x1f52   :  { %1559 = vtanh.f32 %v1189_v8 }
0x1f58   :  { %v1560_v44 = vpop.eup %1559 }
0x1f59   :  { %1192 = vrot.lane.b32.xlu1 %v1560_v44, %s1604_s13 }
0x1fcb   :  { %v1193_v10 = vpop.permute.xlu1 %1192 }
0x1fcc   :  { %v1195_v11 = vmul.f32 %v1193_v10, %v1176_v1 }
0x1fce   :  { %1197 = vst [vmem:[#allocation1] ss:$4 sm:$0xff] %v1195_v11 }
0x1fd5   :  { %v1198_v12 = vld.sshfl [vmem:[#allocation1] sm:$0xff pattern:$0x73625140] }
0x1fd6   :  { %1199 = vrot.lane.b32.xlu2 %v1198_v12, %s1605_s3 }
0x2030   :  { %v1200_v14 = vpop.permute.xlu2 %1199 }
0x2031   :  { %1424 = vmatmul.msk.f32.vlgmr.msrb.gmra.mxu2 %vm113_vm5, %v1200_v14 }
0x20b4   :  { %v1220_v17 = vpop.f32.mrf.mxu2 }
0x20b5   :  { %v1223_v19 = vadd.f32 %v1220_v17, %v805_v16 }
0x20b7   :  { %1561 = vtanh.f32 %v1223_v19  ;;  %v1425_v15 = vmul.f32 -1.442695, %v1223_v19 }
0x20b9   :  { %1563 = vpow2.f32 %v1425_v15 }
0x20bd   :  { %v1562_v20 = vpop.eup %1561 }
0x20be   :  { %1246 = vrot.lane.b32.xlu0 %v1562_v20, %s1604_s13 }
0x20bf   :  { %v1564_v21 = vpop.eup %1563 }
0x20c0   :  { %v1227_v22 = vadd.f32 1.0, %v1564_v21 }
0x20c2   :  { %1565 = vrcp.f32 %v1227_v22  ;;  %v1239_v27 = vand.u32 2147483648, %v1227_v22  ;;  %vm1233_vm0 = vweird.f32 %v1227_v22  ;;  %v1237_v28 = vand.u32 2147483647, %v1227_v22 }
0x20c4   :  { %v1240_v30 = vor.u32 1.1754944e-38, %v1239_v27  ;;  %vm1238_vm2 = vcmp.eq.f32.partialorder %v1237_v28, 8.507059e+37 }
0x20c8   :  { %v1566_v38 = vpop.eup %1565 }
0x20c9   :  { %v1229_v23 = vmul.f32 %v1566_v38, %v1227_v22  ;;  %vm1234_vm15 = vweird.f32 %v1566_v38 }
0x20ca   :  { %vm1235_vm1 = vmor %vm1233_vm0, %vm1234_vm15 }
0x20cb   :  { %v1230_v24 = vsub.f32 1.0, %v1229_v23 }
0x20cd   :  { %v1231_v26 = vmul.f32 %v1566_v38, %v1230_v24 }
0x20cf   :  { %v1232_v56 = vadd.f32 %v1566_v38, %v1231_v26 }
0x20d1   :  { %v1236_v29 = vsel %vm1235_vm1, %v1566_v38, %v1232_v56 }
0x20d2   :  { %v1241_v33 = vsel %vm1238_vm2, %v1240_v30, %v1236_v29 }
0x20d3   :  { %v1244_v35 = vmul.f32 %v1241_v33, %v1189_v8 }
0x2130   :  { %v1247_v31 = vpop.permute.xlu0 %1246 }
0x2131   :  { %v1249_v34 = vmul.f32 %v1247_v31, %v1241_v33 }
0x2133   :  { %1251 = vrot.lane.b32.xlu1 %v1249_v34, %s1604_s13 }
0x21a5   :  { %v1252_v36 = vpop.permute.xlu1 %1251 }
0x21a6   :  { %v1254_v42 = vadd.f32 %v1252_v36, %v1244_v35 }
0x21a8   :  { %1567 = vtanh.f32 %v1254_v42 }
0x21ae   :  { %v1568_v37 = vpop.eup %1567 }
0x21af   :  { %1257 = vrot.lane.b32.xlu2 %v1568_v37, %s1604_s13 }
0x2209   :  { %v1258_v13 = vpop.permute.xlu2 %1257 }
0x220a   :  { %v1260_v39 = vmul.f32 %v1258_v13, %v1241_v33 }
0x220c   :  { %1262 = vst [vmem:[#allocation1] ss:$4 sm:$0xff] %v1260_v39 }
0x2213   :  { %v1263_v40 = vld.sshfl [vmem:[#allocation1] sm:$0xff pattern:$0x73625140] }
0x2214   :  { %1264 = vrot.lane.b32.xlu0 %v1263_v40, %s1605_s3 }
0x2286   :  { %v1265_v3 = vpop.permute.xlu0 %1264 }
0x2287   :  { %1426 = vmatmul.msk.f32.vlgmr.msra.gmra.mxu3 %vm113_vm5, %v1265_v3 }
0x230a   :  { %v1285_v41 = vpop.f32.mrf.mxu3 }
0x230b   :  { %v1288_v45 = vadd.f32 %v1285_v41, %v806_v43 }
0x230d   :  { %1569 = vtanh.f32 %v1288_v45  ;;  %v1427_v47 = vmul.f32 -1.442695, %v1288_v45 }
0x230f   :  { %1571 = vpow2.f32 %v1427_v47 }
0x2313   :  { %v1570_v46 = vpop.eup %1569 }
0x2314   :  { %1311 = vrot.lane.b32.xlu1 %v1570_v46, %s1604_s13 }
0x2315   :  { %v1572_v61 = vpop.eup %1571 }
0x2316   :  { %v1292_v48 = vadd.f32 1.0, %v1572_v61 }
0x2318   :  { %1573 = vrcp.f32 %v1292_v48  ;;  %v1304_v9 = vand.u32 2147483648, %v1292_v48  ;;  %vm1298_vm4 = vweird.f32 %v1292_v48  ;;  %v1302_v25 = vand.u32 2147483647, %v1292_v48 }
0x231a   :  { %v1305_v51 = vor.u32 1.1754944e-38, %v1304_v9  ;;  %vm1303_vm7 = vcmp.eq.f32.partialorder %v1302_v25, 8.507059e+37 }
0x231e   :  { %v1574_v0 = vpop.eup %1573 }
0x231f   :  { %v1294_v49 = vmul.f32 %v1574_v0, %v1292_v48  ;;  %vm1299_vm3 = vweird.f32 %v1574_v0 }
0x2320   :  { %vm1300_vm6 = vmor %vm1298_vm4, %vm1299_vm3 }
0x2321   :  { %v1295_v2 = vsub.f32 1.0, %v1294_v49 }
0x2323   :  { %v1296_v50 = vmul.f32 %v1574_v0, %v1295_v2 }
0x2325   :  { %v1297_v4 = vadd.f32 %v1574_v0, %v1296_v50 }
0x2327   :  { %v1301_v18 = vsel %vm1300_vm6, %v1574_v0, %v1297_v4 }
0x2328   :  { %v1306_v53 = vsel %vm1303_vm7, %v1305_v51, %v1301_v18 }
0x2329   :  { %v1309_v55 = vmul.f32 %v1306_v53, %v1254_v42 }
0x2386   :  { %v1312_v52 = vpop.permute.xlu1 %1311 }
0x2387   :  { %v1314_v54 = vmul.f32 %v1312_v52, %v1306_v53 }
0x2389   :  { %1316 = vrot.lane.b32.xlu2 %v1314_v54, %s1604_s13 }
0x23e3   :  { %v1317_v57 = vpop.permute.xlu2 %1316 }
0x23e4   :  { %v1319_v58 = vadd.f32 %v1317_v57, %v1309_v55 }
0x23e6   :  { %1575 = vtanh.f32 %v1319_v58 }
0x23ec   :  { %v1576_v59 = vpop.eup %1575 }
0x23ed   :  { %1322 = vrot.lane.b32.xlu0 %v1576_v59, %s1604_s13 }
0x245f   :  { %v1323_v63 = vpop.permute.xlu0 %1322 }
0x2460   :  { %v1325_v7 = vmul.f32 %v1323_v63, %v1306_v53 }
0x2462   :  { %v1331_v1 = vpack.c.bf16 %v1325_v7, %v1325_v7 }
0x2464   :  { %1336 = vrot.lane.b32.xlu1 %v1331_v1, %s1605_s3 }
0x24d6   :  { %v1337_v5 = vpop.permute.xlu1 %1336 }
0x24d7   :  { %1436 = vmatmul.msk.bf16.vlgmr.msrb.gmra.mxu0 %vm113_vm5, %v1337_v5 }
0x2554   :  { %v1362_v6 = vpop.f32.mrf.mxu0 }
0x2555   :  { %v1363_v8 = vadd.f32 %v1448_v32, %v1362_v6 }
0x2557   :  { %1367 = vst.msk [vmem:[#allocation3] sm:$0x3] %vm1366_vm8, %v1363_v8 }
0x2558   :  { %1378 = dma.vmem_to_hbm [thread:$0]  %s1374_s10, 32, %s1376_s0, [#allocation4]  }
0x255c   :  { %v1364_v44 = vpop.f32.mrf.mxu0 }
0x255d   :  { %1601 = dma.done.wait [#allocation4], 32  }
0x255e   :  { %1602 = vsyncadd [#allocation4], 4294967264 }
0x255f   :  { %1383 = vsyncpa [#allocation4], 1 }

</bundles_post_ra>
